<compile_context>
chip_gen: v7x
topology: tpu7x:2x2x1
jax: 0.10.0
libtpu: 0.0.40
codegen_flags: <defaults>
</compile_context>

<pallas_src>
import functools

import numpy as np
import jax
import jax.numpy as jnp
from jax import lax
from jax.experimental import pallas as pl
from jax.experimental.pallas import tpu as pltpu


_LSTM_UNROLL_MAX = 32       # fully unroll the recurrence for T <= this, else fori_loop
_H_STORE_CHUNK = 8          # hidden-state store chunk (steps) in the unrolled path
_VMEM_BUDGET = 40 * 2**20   # conservative per-grid-step VMEM budget (fits v5e/v6e/v7x)


def attention_text_embedding_kernel(
    x_ref,        # (T, Bb, E)        bf16 time-major input block (one contiguous DMA)
    w_ih_ref,     # (E, 4H)           bf16, gate columns permuted to (i, f, o, g)
    w_hh_ref,     # (H, 4H)           bf16, gate columns permuted to (i, f, o, g)
    b_lstm_ref,   # (1, 4H)           f32, b_ih + b_hh, permuted to (i, f, o, g)
    w1_ref,       # (K*H, C1)         bf16 conv1 weight with K taps fused
    b1_ref,       # (1, C1)           f32
    w2_ref,       # (K*C1, C2)        bf16 conv2 weight with K taps fused
    b2_ref,       # (1, C2)           f32
    o_ref,        # (Bb, No)          lane-dense output block; [:, :C2*H] is valid
    xw_scratch,   # (T, Bb, 4H)       f32 staged input projection
    lstm_scratch, # (T+2*pad, Bb, H)  f32 padded LSTM hidden states
    a1_scratch,   # (T+2*pad, Bb, C1) f32 padded conv1+ReLU activations
    *, T, E, H, C1, C2, K, pad, Bb, No,
):
  f32 = jnp.float32
  bf16 = jnp.bfloat16

  # Re-zero the conv padding rows every grid step (required for correctness: scratch persists
  # per core and the batch grid axis is "parallel"/megacore-sharded).
  if pad > 0:
    lstm_scratch[0:pad] = jnp.zeros((pad, Bb, H), f32)
    lstm_scratch[T + pad:T + 2 * pad] = jnp.zeros((pad, Bb, H), f32)
    a1_scratch[0:pad] = jnp.zeros((pad, Bb, C1), f32)
    a1_scratch[T + pad:T + 2 * pad] = jnp.zeros((pad, Bb, C1), f32)

  # ---- LSTM: input projection hoisted out of the recurrence (one big bf16 MXU matmul),
  #      staged in VMEM so the serial recurrence only keeps (h, c) live. ----
  w_hh = w_hh_ref[...]                                              # (H, 4H) bf16
  xw = jnp.dot(x_ref[...].reshape(T * Bb, E), w_ih_ref[...],
               preferred_element_type=f32) + b_lstm_ref[...]        # (T*Bb, 4H) f32
  xw_scratch[...] = xw.reshape(T, Bb, 4 * H)

  h = jnp.zeros((Bb, H), f32)
  c = jnp.zeros((Bb, H), f32)

  def gate_step(gates, c_prev):
    # Gate columns pre-permuted to (i, f, o, g): one sigmoid pass + one tanh pass.
    sig = jax.nn.sigmoid(gates[:, 0:3 * H])
    i_g = sig[:, 0 * H:1 * H]
    f_g = sig[:, 1 * H:2 * H]
    o_g = sig[:, 2 * H:3 * H]
    g_g = jnp.tanh(gates[:, 3 * H:4 * H])
    c_new = f_g * c_prev + i_g * g_g
    h_new = o_g * jnp.tanh(c_new)
    return h_new, c_new

  if T <= _LSTM_UNROLL_MAX:
    # Fully unrolled (static indices); hidden states stored to scratch in chunks instead of
    # T separate narrow stores.
    hs = []
    for t in range(T):
      gates = xw_scratch[t] + jnp.dot(h.astype(bf16), w_hh, preferred_element_type=f32)
      h, c = gate_step(gates, c)
      hs.append(h)
      if len(hs) == _H_STORE_CHUNK or t == T - 1:
        t0 = t + 1 - len(hs)
        lstm_scratch[pad + t0:pad + t0 + len(hs)] = jnp.stack(hs, axis=0)
        hs = []
  else:
    # Bounded-unroll recurrence for long sequences: keeps vreg pressure bounded while retaining
    # LLO scheduling visibility.
    def body(t, carry):
      h_c, c_c = carry
      gates = xw_scratch[t] + jnp.dot(h_c.astype(bf16), w_hh, preferred_element_type=f32)
      h_n, c_n = gate_step(gates, c_c)
      lstm_scratch[pl.ds(t + pad, 1)] = h_n[None]
      return h_n, c_n
    h, c = lax.fori_loop(0, T, body, (h, c), unroll=4)

  # ---- conv1 (K taps fused into one bf16 MXU matmul) + ReLU ----
  slabs = [lstm_scratch[k:k + T] for k in range(K)]          # K x (T, Bb, H) static slices
  lstm_tm = slabs[pad]                                       # valid hidden states (T, Bb, H), f32
  win1 = jnp.concatenate(slabs, axis=-1).reshape(T * Bb, K * H)
  out1 = jnp.dot(win1.astype(bf16), w1_ref[...],
                 preferred_element_type=f32) + b1_ref[...]   # (T*Bb, C1)
  a1_scratch[pad:pad + T] = jnp.maximum(out1, 0.0).reshape(T, Bb, C1)

  # ---- conv2 (K taps fused into one bf16 MXU matmul; N = C2 is tiny, leave as-is) ----
  slabs2 = [a1_scratch[k:k + T] for k in range(K)]           # K x (T, Bb, C1)
  win2 = jnp.concatenate(slabs2, axis=-1).reshape(T * Bb, K * C1)
  out2 = jnp.dot(win2.astype(bf16), w2_ref[...],
                 preferred_element_type=f32) + b2_ref[...]   # (T*Bb, C2)
  out2 = out2.reshape(T, Bb, C2)

  # ---- softmax over time (PyTorch dim=2 of the (B, C2, T) tensor), kept in f32 ----
  m = jnp.max(out2, axis=0, keepdims=True)
  e = jnp.exp(out2 - m)
  s = e / jnp.sum(e, axis=0, keepdims=True)                  # (T, Bb, C2)

  # ---- attention pooling (bmm): feature[b, g, :] = sum_t s[t, b, g] * lstm[t, b, :] ----
  feats = [jnp.sum(s[:, :, g:g + 1] * lstm_tm, axis=0) for g in range(C2)]   # C2 x (Bb, H)
  if No > C2 * H:
    feats.append(jnp.zeros((Bb, No - C2 * H), f32))          # pad -> lane-dense unmasked store
  o_ref[...] = jnp.concatenate(feats, axis=-1).astype(o_ref.dtype)           # (Bb, No)


def _round_up(a, m):
  return ((a + m - 1) // m) * m


def _vmem_bytes(T, E, H, C1, C2, K, pad, Bb, No):
  """Rough per-grid-step VMEM footprint (double-buffered I/O blocks + scratch + weights)."""
  f32, bf16 = 4, 2
  x_blk = 2 * T * Bb * E * bf16                       # double-buffered input block
  o_blk = 2 * Bb * No * f32                           # double-buffered output block
  weights = ((E + H) * 4 * H + K * H * C1 + K * C1 * C2) * bf16 + (4 * H + C1 + C2) * f32
  scratch = (T * Bb * 4 * H + (T + 2 * pad) * Bb * (H + C1)) * f32
  return x_blk + o_blk + 2 * weights + scratch


def attention_text_embedding(x, params, *, kernel_size, padding, block_b=128):
  """x: (B, T, E) float32.  Returns (B, conv2_out * hidden_dim)."""
  B, T, E = x.shape
  w_ih, w_hh, b_ih, b_hh = params["w_ih"], params["w_hh"], params["b_ih"], params["b_hh"]
  w1, b1, w2, b2 = params["w1"], params["b1"], params["w2"], params["b2"]

  H = w_hh.shape[1]          # torch w_hh is (4H, H)
  C1 = w1.shape[0]           # torch conv1 weight (C1, H, K)
  C2 = w2.shape[0]           # torch conv2 weight (C2, C1, K)
  K = kernel_size

  # The kernel assumes "same"-length convolutions (output length == T).
  assert 2 * padding == kernel_size - 1, (
      "kernel requires 2*padding == kernel_size - 1 (conv output length must equal T)")
  assert w1.shape == (C1, H, K) and w2.shape == (C2, C1, K)

  # Lane-dense output width: pad C2*H up to at least 128 so the final store is unmasked.
  No = max(128, _round_up(C2 * H, 128))

  # --- batch block size: fill MXU rows (Bb up to block_b) but never exceed the padded batch
  #     or a conservative VMEM budget (also safe on v7x's 64 MiB). ---
  Bb = max(8, min(_round_up(block_b, 8), _round_up(B, 8)))
  while Bb > 8 and _vmem_bytes(T, E, H, C1, C2, K, padding, Bb, No) > _VMEM_BUDGET:
    Bb -= 8
  n_blocks = (B + Bb - 1) // Bb
  Bp = n_blocks * Bb

  est = _vmem_bytes(T, E, H, C1, C2, K, padding, Bb, No)
  vmem_limit = None
  if est > 12 * 2**20:   # may exceed the default scoped VMEM limit -> raise it explicitly
    vmem_limit = int(min(max(2 * est, 32 * 2**20), 56 * 2**20))

  # --- input layout: pad batch, then repack block-major to (n_blocks, T, Bb, E) in ONE host
  #     pass so each grid step's input is a single contiguous DMA; ship as bf16 (halves DMA). ---
  x_p = jnp.asarray(x, jnp.bfloat16)
  if Bp != B:
    x_p = jnp.pad(x_p, ((0, Bp - B), (0, 0), (0, 0)))
  x_blk = jnp.transpose(x_p.reshape(n_blocks, Bb, T, E), (0, 2, 1, 3))   # (nb, T, Bb, E)

  # --- parameter layout prep (layout plumbing only) ---
  # Permute PyTorch gate order (i, f, g, o) -> (i, f, o, g) so the kernel fuses the three
  # sigmoid gates into a single EUP pass.
  perm = np.concatenate([np.arange(0, H), np.arange(H, 2 * H),
                         np.arange(3 * H, 4 * H), np.arange(2 * H, 3 * H)])
  w_ih_t = jnp.asarray(w_ih, jnp.float32).T[:, perm].astype(jnp.bfloat16)   # (E, 4H)
  w_hh_t = jnp.asarray(w_hh, jnp.float32).T[:, perm].astype(jnp.bfloat16)   # (H, 4H)
  b_lstm = (jnp.asarray(b_ih, jnp.float32)
            + jnp.asarray(b_hh, jnp.float32))[perm].reshape(1, 4 * H)
  # Fused conv weights: row (k*Cin + cin) -> W[k*Cin+cin, cout] == torch_w[cout, cin, k].
  w1_f = jnp.transpose(jnp.asarray(w1, jnp.float32), (2, 1, 0)
                       ).reshape(K * H, C1).astype(jnp.bfloat16)
  w2_f = jnp.transpose(jnp.asarray(w2, jnp.float32), (2, 1, 0)
                       ).reshape(K * C1, C2).astype(jnp.bfloat16)
  b1_r = jnp.asarray(b1, jnp.float32).reshape(1, C1)
  b2_r = jnp.asarray(b2, jnp.float32).reshape(1, C2)

  kernel = functools.partial(
      attention_text_embedding_kernel,
      T=T, E=E, H=H, C1=C1, C2=C2, K=K, pad=padding, Bb=Bb, No=No)

  out = pl.pallas_call(
      kernel,
      out_shape=jax.ShapeDtypeStruct((Bp, No), jnp.float32),
      grid_spec=pltpu.PrefetchScalarGridSpec(
          num_scalar_prefetch=0,
          grid=(n_blocks,),
          in_specs=[
              pl.BlockSpec((None, T, Bb, E), lambda g: (g, 0, 0, 0)),   # block-major, squeezed
              pl.BlockSpec((E, 4 * H), lambda g: (0, 0)),
              pl.BlockSpec((H, 4 * H), lambda g: (0, 0)),
              pl.BlockSpec((1, 4 * H), lambda g: (0, 0)),
              pl.BlockSpec((K * H, C1), lambda g: (0, 0)),
              pl.BlockSpec((1, C1), lambda g: (0, 0)),
              pl.BlockSpec((K * C1, C2), lambda g: (0, 0)),
              pl.BlockSpec((1, C2), lambda g: (0, 0)),
          ],
          out_specs=pl.BlockSpec((Bb, No), lambda g: (g, 0)),
          scratch_shapes=[
              pltpu.VMEM((T, Bb, 4 * H), jnp.float32),
              pltpu.VMEM((T + 2 * padding, Bb, H), jnp.float32),
              pltpu.VMEM((T + 2 * padding, Bb, C1), jnp.float32),
          ],
      ),
      compiler_params=pltpu.CompilerParams(
          dimension_semantics=("parallel",),    # no carried state across the batch grid axis
          vmem_limit_bytes=vmem_limit),
  )(x_blk, w_ih_t, w_hh_t, b_lstm, w1_f, b1_r, w2_f, b2_r)

  return out[:B, :C2 * H]


def reference_forward(x, params, *, kernel_size, padding):
  """Pure-JAX (f32) reference mirroring the PyTorch forward (eval mode)."""
  B, T, E = x.shape
  w_ih, w_hh, b_ih, b_hh = params["w_ih"], params["w_hh"], params["b_ih"], params["b_hh"]
  w1, b1, w2, b2 = params["w1"], params["b1"], params["w2"], params["b2"]
  H = w_hh.shape[1]
  K = kernel_size
  pad = padding

  def cell(carry, x_t):
    h, c = carry
    gates = x_t @ w_ih.T + h @ w_hh.T + b_ih + b_hh
    i = jax.nn.sigmoid(gates[:, 0 * H:1 * H])
    f = jax.nn.sigmoid(gates[:, 1 * H:2 * H])
    g = jnp.tanh(gates[:, 2 * H:3 * H])
    o = jax.nn.sigmoid(gates[:, 3 * H:4 * H])
    c = f * c + i * g
    h = o * jnp.tanh(c)
    return (h, c), h

  h0 = jnp.zeros((B, H), jnp.float32)
  c0 = jnp.zeros((B, H), jnp.float32)
  _, hs = lax.scan(cell, (h0, c0), jnp.transpose(x, (1, 0, 2)))
  lstm_out = jnp.transpose(hs, (1, 0, 2))                 # (B, T, H)

  inp = jnp.transpose(lstm_out, (0, 2, 1))                # (B, H, T)
  inp_p = jnp.pad(inp, ((0, 0), (0, 0), (pad, pad)))
  T_out = T + 2 * pad - K + 1
  win1 = jnp.stack([inp_p[:, :, k:k + T_out] for k in range(K)], axis=-1)  # (B,H,T,K)
  out1 = jnp.einsum("bhtk,chk->bct", win1, w1) + b1[None, :, None]
  a1 = jnp.maximum(out1, 0.0)
  a1_p = jnp.pad(a1, ((0, 0), (0, 0), (pad, pad)))
  win2 = jnp.stack([a1_p[:, :, k:k + T_out] for k in range(K)], axis=-1)   # (B,C1,T,K)
  out2 = jnp.einsum("bctk,dck->bdt", win2, w2) + b2[None, :, None]
  sm = jax.nn.softmax(out2, axis=2)                       # (B, C2, T)
  feat = jnp.einsum("bdt,bth->bdh", sm, lstm_out)         # (B, C2, H)
  return feat.reshape(B, -1)


if __name__ == "__main__":
  # Module hyper-params (small, consistent with the forward pass).
  B, T = 2, 8
  embedding_dim = 32
  hidden_dim = 32
  num_layers = 1          # TODO(synk): only num_layers=1, unidirectional supported
  conv1_out = 64
  conv2_out = 2
  kernel_size = 3
  padding = 1
  dropout = 0.25          # identity in eval mode

  key = jax.random.PRNGKey(0)
  ks = jax.random.split(key, 9)
  scale = 0.1
  H = hidden_dim
  params = {
      "w_ih": jax.random.normal(ks[0], (4 * H, embedding_dim), jnp.float32) * scale,
      "w_hh": jax.random.normal(ks[1], (4 * H, H), jnp.float32) * scale,
      "b_ih": jax.random.normal(ks[2], (4 * H,), jnp.float32) * scale,
      "b_hh": jax.random.normal(ks[3], (4 * H,), jnp.float32) * scale,
      "w1":   jax.random.normal(ks[4], (conv1_out, H, kernel_size), jnp.float32) * scale,
      "b1":   jax.random.normal(ks[5], (conv1_out,), jnp.float32) * scale,
      "w2":   jax.random.normal(ks[6], (conv2_out, conv1_out, kernel_size), jnp.float32) * scale,
      "b2":   jax.random.normal(ks[7], (conv2_out,), jnp.float32) * scale,
  }
  x = jax.random.normal(ks[8], (B, T, embedding_dim), jnp.float32)

  out = attention_text_embedding(x, params, kernel_size=kernel_size, padding=padding)
  out = jax.block_until_ready(out)

  ref = reference_forward(x, params, kernel_size=kernel_size, padding=padding)
  ref = jax.block_until_ready(ref)

  assert out.shape == (B, conv2_out * hidden_dim), out.shape
  # Tolerance covers explicit bf16 MXU operands on the LSTM projection/recurrence and the conv
  # path (all matmuls accumulate in f32; gates, cell state, softmax and pooling stay f32).
  np.testing.assert_allclose(np.asarray(out), np.asarray(ref), rtol=2e-2, atol=2e-2)

  print("KERNEL_OK")
</pallas_src>

<mosaic_0001>
module attributes {stable_mosaic.version = 11 : i64} {
  func.func @attention_text_embedding_kernel(%arg0: i32, %arg1: memref<1x8x8x32xbf16, #tpu.memory_space<vmem>>, %arg2: memref<32x128xbf16, #tpu.memory_space<vmem>>, %arg3: memref<32x128xbf16, #tpu.memory_space<vmem>>, %arg4: memref<1x128xf32, #tpu.memory_space<vmem>>, %arg5: memref<96x64xbf16, #tpu.memory_space<vmem>>, %arg6: memref<1x64xf32, #tpu.memory_space<vmem>>, %arg7: memref<192x2xbf16, #tpu.memory_space<vmem>>, %arg8: memref<1x2xf32, #tpu.memory_space<vmem>>, %arg9: memref<8x128xf32, #tpu.memory_space<vmem>>, %arg10: memref<8x8x128xf32, #tpu.memory_space<vmem>>, %arg11: memref<10x8x32xf32, #tpu.memory_space<vmem>>, %arg12: memref<10x8x64xf32, #tpu.memory_space<vmem>>) attributes {dimension_semantics = [#tpu.dimension_semantics<parallel>], iteration_bounds = array<i64: 1>, scalar_prefetch = 0 : i64, scratch_operands = 3 : i64, tpu.core_type = #tpu.core_type<tc>, window_params = [{transform_indices = @transform_0, window_bounds = array<i64: 1, 8, 8, 32>}, {pipeline_mode = #tpu.pipeline_mode<synchronous>, transform_indices = @transform_1, window_bounds = array<i64: 32, 128>}, {pipeline_mode = #tpu.pipeline_mode<synchronous>, transform_indices = @transform_2, window_bounds = array<i64: 32, 128>}, {pipeline_mode = #tpu.pipeline_mode<synchronous>, transform_indices = @transform_3, window_bounds = array<i64: 1, 128>}, {pipeline_mode = #tpu.pipeline_mode<synchronous>, transform_indices = @transform_4, window_bounds = array<i64: 96, 64>}, {pipeline_mode = #tpu.pipeline_mode<synchronous>, transform_indices = @transform_5, window_bounds = array<i64: 1, 64>}, {pipeline_mode = #tpu.pipeline_mode<synchronous>, transform_indices = @transform_6, window_bounds = array<i64: 192, 2>}, {pipeline_mode = #tpu.pipeline_mode<synchronous>, transform_indices = @transform_7, window_bounds = array<i64: 1, 2>}, {transform_indices = @transform_8, window_bounds = array<i64: 8, 128>}]} {
    %cst = arith.constant 0.000000e+00 : f32
    %0 = vector.broadcast %cst : f32 to vector<1x8x32xf32>
    %c0 = arith.constant 0 : index
    %c0_0 = arith.constant 0 : index
    %c0_1 = arith.constant 0 : index
    %1 = vector.load %arg11[%c0, %c0_0, %c0_1] : memref<10x8x32xf32, #tpu.memory_space<vmem>>, vector<1x8x32xf32>
    tpu.vector_store %arg11[%c0, %c0_0, %c0_1], %0 {strides = array<i32>} : memref<10x8x32xf32, #tpu.memory_space<vmem>>, vector<1x8x32xf32>,
    %cst_2 = arith.constant 0.000000e+00 : f32
    %2 = vector.broadcast %cst_2 : f32 to vector<1x8x32xf32>
    %c9 = arith.constant 9 : index
    %c0_3 = arith.constant 0 : index
    %c0_4 = arith.constant 0 : index
    %3 = vector.load %arg11[%c9, %c0_3, %c0_4] : memref<10x8x32xf32, #tpu.memory_space<vmem>>, vector<1x8x32xf32>
    tpu.vector_store %arg11[%c9, %c0_3, %c0_4], %2 {strides = array<i32>} : memref<10x8x32xf32, #tpu.memory_space<vmem>>, vector<1x8x32xf32>,
    %cst_5 = arith.constant 0.000000e+00 : f32
    %4 = vector.broadcast %cst_5 : f32 to vector<1x8x64xf32>
    %c0_6 = arith.constant 0 : index
    %c0_7 = arith.constant 0 : index
    %c0_8 = arith.constant 0 : index
    %5 = vector.load %arg12[%c0_6, %c0_7, %c0_8] : memref<10x8x64xf32, #tpu.memory_space<vmem>>, vector<1x8x64xf32>
    tpu.vector_store %arg12[%c0_6, %c0_7, %c0_8], %4 {strides = array<i32>} : memref<10x8x64xf32, #tpu.memory_space<vmem>>, vector<1x8x64xf32>,
    %cst_9 = arith.constant 0.000000e+00 : f32
    %6 = vector.broadcast %cst_9 : f32 to vector<1x8x64xf32>
    %c9_10 = arith.constant 9 : index
    %c0_11 = arith.constant 0 : index
    %c0_12 = arith.constant 0 : index
    %7 = vector.load %arg12[%c9_10, %c0_11, %c0_12] : memref<10x8x64xf32, #tpu.memory_space<vmem>>, vector<1x8x64xf32>
    tpu.vector_store %arg12[%c9_10, %c0_11, %c0_12], %6 {strides = array<i32>} : memref<10x8x64xf32, #tpu.memory_space<vmem>>, vector<1x8x64xf32>,
    %c0_13 = arith.constant 0 : index
    %c0_14 = arith.constant 0 : index
    %8 = vector.load %arg3[%c0_13, %c0_14] : memref<32x128xbf16, #tpu.memory_space<vmem>>, vector<32x128xbf16>
    %c0_15 = arith.constant 0 : index
    %c0_16 = arith.constant 0 : index
    %c0_17 = arith.constant 0 : index
    %c0_18 = arith.constant 0 : index
    %9 = vector.load %arg1[%c0_15, %c0_16, %c0_17, %c0_18] : memref<1x8x8x32xbf16, #tpu.memory_space<vmem>>, vector<1x8x8x32xbf16>
    %10 = vector.shape_cast %9 : vector<1x8x8x32xbf16> to vector<8x8x32xbf16>
    %11 = vector.shape_cast %10 : vector<8x8x32xbf16> to vector<64x32xbf16>
    %c0_19 = arith.constant 0 : index
    %c0_20 = arith.constant 0 : index
    %12 = vector.load %arg2[%c0_19, %c0_20] : memref<32x128xbf16, #tpu.memory_space<vmem>>, vector<32x128xbf16>
    %cst_21 = arith.constant dense<0.000000e+00> : vector<64x128xf32>
    %13 = tpu.matmul %11, %12, %cst_21 {dimension_numbers = #tpu.dot_dimension_numbers<[1], [0], [0], [1], [0, 0, 1, 1], [], []>} : vector<64x32xbf16>, vector<32x128xbf16>, vector<64x128xf32> -> vector<64x128xf32>
    %c0_22 = arith.constant 0 : index
    %c0_23 = arith.constant 0 : index
    %14 = vector.load %arg4[%c0_22, %c0_23] : memref<1x128xf32, #tpu.memory_space<vmem>>, vector<1x128xf32>
    %15 = vector.broadcast %14 : vector<1x128xf32> to vector<64x128xf32>
    %16 = arith.addf %13, %15 : vector<64x128xf32>
    %17 = vector.shape_cast %16 : vector<64x128xf32> to vector<8x8x128xf32>
    %c0_24 = arith.constant 0 : index
    %c0_25 = arith.constant 0 : index
    %c0_26 = arith.constant 0 : index
    %18 = vector.load %arg10[%c0_24, %c0_25, %c0_26] : memref<8x8x128xf32, #tpu.memory_space<vmem>>, vector<8x8x128xf32>
    tpu.vector_store %arg10[%c0_24, %c0_25, %c0_26], %17 {strides = array<i32>} : memref<8x8x128xf32, #tpu.memory_space<vmem>>, vector<8x8x128xf32>,
    %cst_27 = arith.constant 0.000000e+00 : f32
    %19 = vector.broadcast %cst_27 : f32 to vector<8x32xf32>
    %cst_28 = arith.constant 0.000000e+00 : f32
    %20 = vector.broadcast %cst_28 : f32 to vector<8x32xf32>
    %c0_29 = arith.constant 0 : index
    %c0_30 = arith.constant 0 : index
    %c0_31 = arith.constant 0 : index
    %21 = vector.load %arg10[%c0_29, %c0_30, %c0_31] : memref<8x8x128xf32, #tpu.memory_space<vmem>>, vector<1x8x128xf32>
    %22 = vector.shape_cast %21 : vector<1x8x128xf32> to vector<8x128xf32>
    %23 = arith.truncf %19 : vector<8x32xf32> to vector<8x32xbf16>
    %cst_32 = arith.constant dense<0.000000e+00> : vector<8x128xf32>
    %24 = tpu.matmul %23, %8, %cst_32 {dimension_numbers = #tpu.dot_dimension_numbers<[1], [0], [0], [1], [0, 0, 1, 1], [], []>} : vector<8x32xbf16>, vector<32x128xbf16>, vector<8x128xf32> -> vector<8x128xf32>
    %25 = arith.addf %22, %24 : vector<8x128xf32>
    %26 = vector.extract_strided_slice %25 {offsets = [0, 0], sizes = [8, 96], strides = [1, 1]} : vector<8x128xf32> to vector<8x96xf32>
    %27 = arith.negf %26 : vector<8x96xf32>
    %28 = math.exp %27 : vector<8x96xf32>
    %cst_33 = arith.constant 1.000000e+00 : f32
    %29 = vector.broadcast %cst_33 : f32 to vector<8x96xf32>
    %30 = arith.addf %29, %28 : vector<8x96xf32>
    %31 = arith.divf %29, %30 : vector<8x96xf32>
    %32 = vector.extract_strided_slice %31 {offsets = [0, 0], sizes = [8, 32], strides = [1, 1]} : vector<8x96xf32> to vector<8x32xf32>
    %33 = vector.extract_strided_slice %31 {offsets = [0, 32], sizes = [8, 32], strides = [1, 1]} : vector<8x96xf32> to vector<8x32xf32>
    %34 = vector.extract_strided_slice %31 {offsets = [0, 64], sizes = [8, 32], strides = [1, 1]} : vector<8x96xf32> to vector<8x32xf32>
    %35 = vector.extract_strided_slice %25 {offsets = [0, 96], sizes = [8, 32], strides = [1, 1]} : vector<8x128xf32> to vector<8x32xf32>
    %36 = math.tanh %35 : vector<8x32xf32>
    %37 = arith.mulf %33, %20 : vector<8x32xf32>
    %38 = arith.mulf %32, %36 : vector<8x32xf32>
    %39 = arith.addf %37, %38 : vector<8x32xf32>
    %40 = math.tanh %39 : vector<8x32xf32>
    %41 = arith.mulf %34, %40 : vector<8x32xf32>
    %c1 = arith.constant 1 : index
    %c0_34 = arith.constant 0 : index
    %c0_35 = arith.constant 0 : index
    %42 = vector.load %arg10[%c1, %c0_34, %c0_35] : memref<8x8x128xf32, #tpu.memory_space<vmem>>, vector<1x8x128xf32>
    %43 = vector.shape_cast %42 : vector<1x8x128xf32> to vector<8x128xf32>
    %44 = arith.truncf %41 : vector<8x32xf32> to vector<8x32xbf16>
    %cst_36 = arith.constant dense<0.000000e+00> : vector<8x128xf32>
    %45 = tpu.matmul %44, %8, %cst_36 {dimension_numbers = #tpu.dot_dimension_numbers<[1], [0], [0], [1], [0, 0, 1, 1], [], []>} : vector<8x32xbf16>, vector<32x128xbf16>, vector<8x128xf32> -> vector<8x128xf32>
    %46 = arith.addf %43, %45 : vector<8x128xf32>
    %47 = vector.extract_strided_slice %46 {offsets = [0, 0], sizes = [8, 96], strides = [1, 1]} : vector<8x128xf32> to vector<8x96xf32>
    %48 = arith.negf %47 : vector<8x96xf32>
    %49 = math.exp %48 : vector<8x96xf32>
    %cst_37 = arith.constant 1.000000e+00 : f32
    %50 = vector.broadcast %cst_37 : f32 to vector<8x96xf32>
    %51 = arith.addf %50, %49 : vector<8x96xf32>
    %52 = arith.divf %50, %51 : vector<8x96xf32>
    %53 = vector.extract_strided_slice %52 {offsets = [0, 0], sizes = [8, 32], strides = [1, 1]} : vector<8x96xf32> to vector<8x32xf32>
    %54 = vector.extract_strided_slice %52 {offsets = [0, 32], sizes = [8, 32], strides = [1, 1]} : vector<8x96xf32> to vector<8x32xf32>
    %55 = vector.extract_strided_slice %52 {offsets = [0, 64], sizes = [8, 32], strides = [1, 1]} : vector<8x96xf32> to vector<8x32xf32>
    %56 = vector.extract_strided_slice %46 {offsets = [0, 96], sizes = [8, 32], strides = [1, 1]} : vector<8x128xf32> to vector<8x32xf32>
    %57 = math.tanh %56 : vector<8x32xf32>
    %58 = arith.mulf %54, %39 : vector<8x32xf32>
    %59 = arith.mulf %53, %57 : vector<8x32xf32>
    %60 = arith.addf %58, %59 : vector<8x32xf32>
    %61 = math.tanh %60 : vector<8x32xf32>
    %62 = arith.mulf %55, %61 : vector<8x32xf32>
    %c2 = arith.constant 2 : index
    %c0_38 = arith.constant 0 : index
    %c0_39 = arith.constant 0 : index
    %63 = vector.load %arg10[%c2, %c0_38, %c0_39] : memref<8x8x128xf32, #tpu.memory_space<vmem>>, vector<1x8x128xf32>
    %64 = vector.shape_cast %63 : vector<1x8x128xf32> to vector<8x128xf32>
    %65 = arith.truncf %62 : vector<8x32xf32> to vector<8x32xbf16>
    %cst_40 = arith.constant dense<0.000000e+00> : vector<8x128xf32>
    %66 = tpu.matmul %65, %8, %cst_40 {dimension_numbers = #tpu.dot_dimension_numbers<[1], [0], [0], [1], [0, 0, 1, 1], [], []>} : vector<8x32xbf16>, vector<32x128xbf16>, vector<8x128xf32> -> vector<8x128xf32>
    %67 = arith.addf %64, %66 : vector<8x128xf32>
    %68 = vector.extract_strided_slice %67 {offsets = [0, 0], sizes = [8, 96], strides = [1, 1]} : vector<8x128xf32> to vector<8x96xf32>
    %69 = arith.negf %68 : vector<8x96xf32>
    %70 = math.exp %69 : vector<8x96xf32>
    %cst_41 = arith.constant 1.000000e+00 : f32
    %71 = vector.broadcast %cst_41 : f32 to vector<8x96xf32>
    %72 = arith.addf %71, %70 : vector<8x96xf32>
    %73 = arith.divf %71, %72 : vector<8x96xf32>
    %74 = vector.extract_strided_slice %73 {offsets = [0, 0], sizes = [8, 32], strides = [1, 1]} : vector<8x96xf32> to vector<8x32xf32>
    %75 = vector.extract_strided_slice %73 {offsets = [0, 32], sizes = [8, 32], strides = [1, 1]} : vector<8x96xf32> to vector<8x32xf32>
    %76 = vector.extract_strided_slice %73 {offsets = [0, 64], sizes = [8, 32], strides = [1, 1]} : vector<8x96xf32> to vector<8x32xf32>
    %77 = vector.extract_strided_slice %67 {offsets = [0, 96], sizes = [8, 32], strides = [1, 1]} : vector<8x128xf32> to vector<8x32xf32>
    %78 = math.tanh %77 : vector<8x32xf32>
    %79 = arith.mulf %75, %60 : vector<8x32xf32>
    %80 = arith.mulf %74, %78 : vector<8x32xf32>
    %81 = arith.addf %79, %80 : vector<8x32xf32>
    %82 = math.tanh %81 : vector<8x32xf32>
    %83 = arith.mulf %76, %82 : vector<8x32xf32>
    %c3 = arith.constant 3 : index
    %c0_42 = arith.constant 0 : index
    %c0_43 = arith.constant 0 : index
    %84 = vector.load %arg10[%c3, %c0_42, %c0_43] : memref<8x8x128xf32, #tpu.memory_space<vmem>>, vector<1x8x128xf32>
    %85 = vector.shape_cast %84 : vector<1x8x128xf32> to vector<8x128xf32>
    %86 = arith.truncf %83 : vector<8x32xf32> to vector<8x32xbf16>
    %cst_44 = arith.constant dense<0.000000e+00> : vector<8x128xf32>
    %87 = tpu.matmul %86, %8, %cst_44 {dimension_numbers = #tpu.dot_dimension_numbers<[1], [0], [0], [1], [0, 0, 1, 1], [], []>} : vector<8x32xbf16>, vector<32x128xbf16>, vector<8x128xf32> -> vector<8x128xf32>
    %88 = arith.addf %85, %87 : vector<8x128xf32>
    %89 = vector.extract_strided_slice %88 {offsets = [0, 0], sizes = [8, 96], strides = [1, 1]} : vector<8x128xf32> to vector<8x96xf32>
    %90 = arith.negf %89 : vector<8x96xf32>
    %91 = math.exp %90 : vector<8x96xf32>
    %cst_45 = arith.constant 1.000000e+00 : f32
    %92 = vector.broadcast %cst_45 : f32 to vector<8x96xf32>
    %93 = arith.addf %92, %91 : vector<8x96xf32>
    %94 = arith.divf %92, %93 : vector<8x96xf32>
    %95 = vector.extract_strided_slice %94 {offsets = [0, 0], sizes = [8, 32], strides = [1, 1]} : vector<8x96xf32> to vector<8x32xf32>
    %96 = vector.extract_strided_slice %94 {offsets = [0, 32], sizes = [8, 32], strides = [1, 1]} : vector<8x96xf32> to vector<8x32xf32>
    %97 = vector.extract_strided_slice %94 {offsets = [0, 64], sizes = [8, 32], strides = [1, 1]} : vector<8x96xf32> to vector<8x32xf32>
    %98 = vector.extract_strided_slice %88 {offsets = [0, 96], sizes = [8, 32], strides = [1, 1]} : vector<8x128xf32> to vector<8x32xf32>
    %99 = math.tanh %98 : vector<8x32xf32>
    %100 = arith.mulf %96, %81 : vector<8x32xf32>
    %101 = arith.mulf %95, %99 : vector<8x32xf32>
    %102 = arith.addf %100, %101 : vector<8x32xf32>
    %103 = math.tanh %102 : vector<8x32xf32>
    %104 = arith.mulf %97, %103 : vector<8x32xf32>
    %c4 = arith.constant 4 : index
    %c0_46 = arith.constant 0 : index
    %c0_47 = arith.constant 0 : index
    %105 = vector.load %arg10[%c4, %c0_46, %c0_47] : memref<8x8x128xf32, #tpu.memory_space<vmem>>, vector<1x8x128xf32>
    %106 = vector.shape_cast %105 : vector<1x8x128xf32> to vector<8x128xf32>
    %107 = arith.truncf %104 : vector<8x32xf32> to vector<8x32xbf16>
    %cst_48 = arith.constant dense<0.000000e+00> : vector<8x128xf32>
    %108 = tpu.matmul %107, %8, %cst_48 {dimension_numbers = #tpu.dot_dimension_numbers<[1], [0], [0], [1], [0, 0, 1, 1], [], []>} : vector<8x32xbf16>, vector<32x128xbf16>, vector<8x128xf32> -> vector<8x128xf32>
    %109 = arith.addf %106, %108 : vector<8x128xf32>
    %110 = vector.extract_strided_slice %109 {offsets = [0, 0], sizes = [8, 96], strides = [1, 1]} : vector<8x128xf32> to vector<8x96xf32>
    %111 = arith.negf %110 : vector<8x96xf32>
    %112 = math.exp %111 : vector<8x96xf32>
    %cst_49 = arith.constant 1.000000e+00 : f32
    %113 = vector.broadcast %cst_49 : f32 to vector<8x96xf32>
    %114 = arith.addf %113, %112 : vector<8x96xf32>
    %115 = arith.divf %113, %114 : vector<8x96xf32>
    %116 = vector.extract_strided_slice %115 {offsets = [0, 0], sizes = [8, 32], strides = [1, 1]} : vector<8x96xf32> to vector<8x32xf32>
    %117 = vector.extract_strided_slice %115 {offsets = [0, 32], sizes = [8, 32], strides = [1, 1]} : vector<8x96xf32> to vector<8x32xf32>
    %118 = vector.extract_strided_slice %115 {offsets = [0, 64], sizes = [8, 32], strides = [1, 1]} : vector<8x96xf32> to vector<8x32xf32>
    %119 = vector.extract_strided_slice %109 {offsets = [0, 96], sizes = [8, 32], strides = [1, 1]} : vector<8x128xf32> to vector<8x32xf32>
    %120 = math.tanh %119 : vector<8x32xf32>
    %121 = arith.mulf %117, %102 : vector<8x32xf32>
    %122 = arith.mulf %116, %120 : vector<8x32xf32>
    %123 = arith.addf %121, %122 : vector<8x32xf32>
    %124 = math.tanh %123 : vector<8x32xf32>
    %125 = arith.mulf %118, %124 : vector<8x32xf32>
    %c5 = arith.constant 5 : index
    %c0_50 = arith.constant 0 : index
    %c0_51 = arith.constant 0 : index
    %126 = vector.load %arg10[%c5, %c0_50, %c0_51] : memref<8x8x128xf32, #tpu.memory_space<vmem>>, vector<1x8x128xf32>
    %127 = vector.shape_cast %126 : vector<1x8x128xf32> to vector<8x128xf32>
    %128 = arith.truncf %125 : vector<8x32xf32> to vector<8x32xbf16>
    %cst_52 = arith.constant dense<0.000000e+00> : vector<8x128xf32>
    %129 = tpu.matmul %128, %8, %cst_52 {dimension_numbers = #tpu.dot_dimension_numbers<[1], [0], [0], [1], [0, 0, 1, 1], [], []>} : vector<8x32xbf16>, vector<32x128xbf16>, vector<8x128xf32> -> vector<8x128xf32>
    %130 = arith.addf %127, %129 : vector<8x128xf32>
    %131 = vector.extract_strided_slice %130 {offsets = [0, 0], sizes = [8, 96], strides = [1, 1]} : vector<8x128xf32> to vector<8x96xf32>
    %132 = arith.negf %131 : vector<8x96xf32>
    %133 = math.exp %132 : vector<8x96xf32>
    %cst_53 = arith.constant 1.000000e+00 : f32
    %134 = vector.broadcast %cst_53 : f32 to vector<8x96xf32>
    %135 = arith.addf %134, %133 : vector<8x96xf32>
    %136 = arith.divf %134, %135 : vector<8x96xf32>
    %137 = vector.extract_strided_slice %136 {offsets = [0, 0], sizes = [8, 32], strides = [1, 1]} : vector<8x96xf32> to vector<8x32xf32>
    %138 = vector.extract_strided_slice %136 {offsets = [0, 32], sizes = [8, 32], strides = [1, 1]} : vector<8x96xf32> to vector<8x32xf32>
    %139 = vector.extract_strided_slice %136 {offsets = [0, 64], sizes = [8, 32], strides = [1, 1]} : vector<8x96xf32> to vector<8x32xf32>
    %140 = vector.extract_strided_slice %130 {offsets = [0, 96], sizes = [8, 32], strides = [1, 1]} : vector<8x128xf32> to vector<8x32xf32>
    %141 = math.tanh %140 : vector<8x32xf32>
    %142 = arith.mulf %138, %123 : vector<8x32xf32>
    %143 = arith.mulf %137, %141 : vector<8x32xf32>
    %144 = arith.addf %142, %143 : vector<8x32xf32>
    %145 = math.tanh %144 : vector<8x32xf32>
    %146 = arith.mulf %139, %145 : vector<8x32xf32>
    %c6 = arith.constant 6 : index
    %c0_54 = arith.constant 0 : index
    %c0_55 = arith.constant 0 : index
    %147 = vector.load %arg10[%c6, %c0_54, %c0_55] : memref<8x8x128xf32, #tpu.memory_space<vmem>>, vector<1x8x128xf32>
    %148 = vector.shape_cast %147 : vector<1x8x128xf32> to vector<8x128xf32>
    %149 = arith.truncf %146 : vector<8x32xf32> to vector<8x32xbf16>
    %cst_56 = arith.constant dense<0.000000e+00> : vector<8x128xf32>
    %150 = tpu.matmul %149, %8, %cst_56 {dimension_numbers = #tpu.dot_dimension_numbers<[1], [0], [0], [1], [0, 0, 1, 1], [], []>} : vector<8x32xbf16>, vector<32x128xbf16>, vector<8x128xf32> -> vector<8x128xf32>
    %151 = arith.addf %148, %150 : vector<8x128xf32>
    %152 = vector.extract_strided_slice %151 {offsets = [0, 0], sizes = [8, 96], strides = [1, 1]} : vector<8x128xf32> to vector<8x96xf32>
    %153 = arith.negf %152 : vector<8x96xf32>
    %154 = math.exp %153 : vector<8x96xf32>
    %cst_57 = arith.constant 1.000000e+00 : f32
    %155 = vector.broadcast %cst_57 : f32 to vector<8x96xf32>
    %156 = arith.addf %155, %154 : vector<8x96xf32>
    %157 = arith.divf %155, %156 : vector<8x96xf32>
    %158 = vector.extract_strided_slice %157 {offsets = [0, 0], sizes = [8, 32], strides = [1, 1]} : vector<8x96xf32> to vector<8x32xf32>
    %159 = vector.extract_strided_slice %157 {offsets = [0, 32], sizes = [8, 32], strides = [1, 1]} : vector<8x96xf32> to vector<8x32xf32>
    %160 = vector.extract_strided_slice %157 {offsets = [0, 64], sizes = [8, 32], strides = [1, 1]} : vector<8x96xf32> to vector<8x32xf32>
    %161 = vector.extract_strided_slice %151 {offsets = [0, 96], sizes = [8, 32], strides = [1, 1]} : vector<8x128xf32> to vector<8x32xf32>
    %162 = math.tanh %161 : vector<8x32xf32>
    %163 = arith.mulf %159, %144 : vector<8x32xf32>
    %164 = arith.mulf %158, %162 : vector<8x32xf32>
    %165 = arith.addf %163, %164 : vector<8x32xf32>
    %166 = math.tanh %165 : vector<8x32xf32>
    %167 = arith.mulf %160, %166 : vector<8x32xf32>
    %c7 = arith.constant 7 : index
    %c0_58 = arith.constant 0 : index
    %c0_59 = arith.constant 0 : index
    %168 = vector.load %arg10[%c7, %c0_58, %c0_59] : memref<8x8x128xf32, #tpu.memory_space<vmem>>, vector<1x8x128xf32>
    %169 = vector.shape_cast %168 : vector<1x8x128xf32> to vector<8x128xf32>
    %170 = arith.truncf %167 : vector<8x32xf32> to vector<8x32xbf16>
    %cst_60 = arith.constant dense<0.000000e+00> : vector<8x128xf32>
    %171 = tpu.matmul %170, %8, %cst_60 {dimension_numbers = #tpu.dot_dimension_numbers<[1], [0], [0], [1], [0, 0, 1, 1], [], []>} : vector<8x32xbf16>, vector<32x128xbf16>, vector<8x128xf32> -> vector<8x128xf32>
    %172 = arith.addf %169, %171 : vector<8x128xf32>
    %173 = vector.extract_strided_slice %172 {offsets = [0, 0], sizes = [8, 96], strides = [1, 1]} : vector<8x128xf32> to vector<8x96xf32>
    %174 = arith.negf %173 : vector<8x96xf32>
    %175 = math.exp %174 : vector<8x96xf32>
    %cst_61 = arith.constant 1.000000e+00 : f32
    %176 = vector.broadcast %cst_61 : f32 to vector<8x96xf32>
    %177 = arith.addf %176, %175 : vector<8x96xf32>
    %178 = arith.divf %176, %177 : vector<8x96xf32>
    %179 = vector.extract_strided_slice %178 {offsets = [0, 0], sizes = [8, 32], strides = [1, 1]} : vector<8x96xf32> to vector<8x32xf32>
    %180 = vector.extract_strided_slice %178 {offsets = [0, 32], sizes = [8, 32], strides = [1, 1]} : vector<8x96xf32> to vector<8x32xf32>
    %181 = vector.extract_strided_slice %178 {offsets = [0, 64], sizes = [8, 32], strides = [1, 1]} : vector<8x96xf32> to vector<8x32xf32>
    %182 = vector.extract_strided_slice %172 {offsets = [0, 96], sizes = [8, 32], strides = [1, 1]} : vector<8x128xf32> to vector<8x32xf32>
    %183 = math.tanh %182 : vector<8x32xf32>
    %184 = arith.mulf %180, %165 : vector<8x32xf32>
    %185 = arith.mulf %179, %183 : vector<8x32xf32>
    %186 = arith.addf %184, %185 : vector<8x32xf32>
    %187 = math.tanh %186 : vector<8x32xf32>
    %188 = arith.mulf %181, %187 : vector<8x32xf32>
    %189 = vector.shape_cast %41 : vector<8x32xf32> to vector<1x8x32xf32>
    %190 = vector.shape_cast %62 : vector<8x32xf32> to vector<1x8x32xf32>
    %191 = vector.shape_cast %83 : vector<8x32xf32> to vector<1x8x32xf32>
    %192 = vector.shape_cast %104 : vector<8x32xf32> to vector<1x8x32xf32>
    %193 = vector.shape_cast %125 : vector<8x32xf32> to vector<1x8x32xf32>
    %194 = vector.shape_cast %146 : vector<8x32xf32> to vector<1x8x32xf32>
    %195 = vector.shape_cast %167 : vector<8x32xf32> to vector<1x8x32xf32>
    %196 = vector.shape_cast %188 : vector<8x32xf32> to vector<1x8x32xf32>
    %197 = tpu.concatenate %189, %190, %191, %192, %193, %194, %195, %196 in 0 : vector<1x8x32xf32>, vector<1x8x32xf32>, vector<1x8x32xf32>, vector<1x8x32xf32>, vector<1x8x32xf32>, vector<1x8x32xf32>, vector<1x8x32xf32>, vector<1x8x32xf32> -> vector<8x8x32xf32>
    %c1_62 = arith.constant 1 : index
    %c0_63 = arith.constant 0 : index
    %c0_64 = arith.constant 0 : index
    %198 = vector.load %arg11[%c1_62, %c0_63, %c0_64] : memref<10x8x32xf32, #tpu.memory_space<vmem>>, vector<8x8x32xf32>
    tpu.vector_store %arg11[%c1_62, %c0_63, %c0_64], %197 {strides = array<i32>} : memref<10x8x32xf32, #tpu.memory_space<vmem>>, vector<8x8x32xf32>,
    %c0_65 = arith.constant 0 : index
    %c0_66 = arith.constant 0 : index
    %c0_67 = arith.constant 0 : index
    %199 = vector.load %arg11[%c0_65, %c0_66, %c0_67] : memref<10x8x32xf32, #tpu.memory_space<vmem>>, vector<8x8x32xf32>
    %c1_68 = arith.constant 1 : index
    %c0_69 = arith.constant 0 : index
    %c0_70 = arith.constant 0 : index
    %200 = vector.load %arg11[%c1_68, %c0_69, %c0_70] : memref<10x8x32xf32, #tpu.memory_space<vmem>>, vector<8x8x32xf32>
    %c2_71 = arith.constant 2 : index
    %c0_72 = arith.constant 0 : index
    %c0_73 = arith.constant 0 : index
    %201 = vector.load %arg11[%c2_71, %c0_72, %c0_73] : memref<10x8x32xf32, #tpu.memory_space<vmem>>, vector<8x8x32xf32>
    %202 = tpu.concatenate %199, %200, %201 in 2 : vector<8x8x32xf32>, vector<8x8x32xf32>, vector<8x8x32xf32> -> vector<8x8x96xf32>
    %203 = vector.shape_cast %202 : vector<8x8x96xf32> to vector<64x96xf32>
    %204 = arith.truncf %203 : vector<64x96xf32> to vector<64x96xbf16>
    %c0_74 = arith.constant 0 : index
    %c0_75 = arith.constant 0 : index
    %205 = vector.load %arg5[%c0_74, %c0_75] : memref<96x64xbf16, #tpu.memory_space<vmem>>, vector<96x64xbf16>
    %cst_76 = arith.constant dense<0.000000e+00> : vector<64x64xf32>
    %206 = tpu.matmul %204, %205, %cst_76 {dimension_numbers = #tpu.dot_dimension_numbers<[1], [0], [0], [1], [0, 0, 1, 1], [], []>} : vector<64x96xbf16>, vector<96x64xbf16>, vector<64x64xf32> -> vector<64x64xf32>
    %c0_77 = arith.constant 0 : index
    %c0_78 = arith.constant 0 : index
    %207 = vector.load %arg6[%c0_77, %c0_78] : memref<1x64xf32, #tpu.memory_space<vmem>>, vector<1x64xf32>
    %208 = vector.broadcast %207 : vector<1x64xf32> to vector<64x64xf32>
    %209 = arith.addf %206, %208 : vector<64x64xf32>
    %cst_79 = arith.constant 0.000000e+00 : f32
    %210 = vector.broadcast %cst_79 : f32 to vector<64x64xf32>
    %211 = arith.maximumf %209, %210 : vector<64x64xf32>
    %212 = vector.shape_cast %211 : vector<64x64xf32> to vector<8x8x64xf32>
    %c1_80 = arith.constant 1 : index
    %c0_81 = arith.constant 0 : index
    %c0_82 = arith.constant 0 : index
    %213 = vector.load %arg12[%c1_80, %c0_81, %c0_82] : memref<10x8x64xf32, #tpu.memory_space<vmem>>, vector<8x8x64xf32>
    tpu.vector_store %arg12[%c1_80, %c0_81, %c0_82], %212 {strides = array<i32>} : memref<10x8x64xf32, #tpu.memory_space<vmem>>, vector<8x8x64xf32>,
    %c0_83 = arith.constant 0 : index
    %c0_84 = arith.constant 0 : index
    %c0_85 = arith.constant 0 : index
    %214 = vector.load %arg12[%c0_83, %c0_84, %c0_85] : memref<10x8x64xf32, #tpu.memory_space<vmem>>, vector<8x8x64xf32>
    %c1_86 = arith.constant 1 : index
    %c0_87 = arith.constant 0 : index
    %c0_88 = arith.constant 0 : index
    %215 = vector.load %arg12[%c1_86, %c0_87, %c0_88] : memref<10x8x64xf32, #tpu.memory_space<vmem>>, vector<8x8x64xf32>
    %c2_89 = arith.constant 2 : index
    %c0_90 = arith.constant 0 : index
    %c0_91 = arith.constant 0 : index
    %216 = vector.load %arg12[%c2_89, %c0_90, %c0_91] : memref<10x8x64xf32, #tpu.memory_space<vmem>>, vector<8x8x64xf32>
    %217 = tpu.concatenate %214, %215, %216 in 2 : vector<8x8x64xf32>, vector<8x8x64xf32>, vector<8x8x64xf32> -> vector<8x8x192xf32>
    %218 = vector.shape_cast %217 : vector<8x8x192xf32> to vector<64x192xf32>
    %219 = arith.truncf %218 : vector<64x192xf32> to vector<64x192xbf16>
    %c0_92 = arith.constant 0 : index
    %c0_93 = arith.constant 0 : index
    %220 = vector.load %arg7[%c0_92, %c0_93] : memref<192x2xbf16, #tpu.memory_space<vmem>>, vector<192x2xbf16>
    %cst_94 = arith.constant dense<0.000000e+00> : vector<64x2xf32>
    %221 = tpu.matmul %219, %220, %cst_94 {dimension_numbers = #tpu.dot_dimension_numbers<[1], [0], [0], [1], [0, 0, 1, 1], [], []>} : vector<64x192xbf16>, vector<192x2xbf16>, vector<64x2xf32> -> vector<64x2xf32>
    %c0_95 = arith.constant 0 : index
    %c0_96 = arith.constant 0 : index
    %222 = vector.load %arg8[%c0_95, %c0_96] : memref<1x2xf32, #tpu.memory_space<vmem>>, vector<1x2xf32>
    %223 = vector.broadcast %222 : vector<1x2xf32> to vector<64x2xf32>
    %224 = arith.addf %221, %223 : vector<64x2xf32>
    %225 = vector.shape_cast %224 : vector<64x2xf32> to vector<8x8x2xf32>
    %cst_97 = arith.constant dense<0xFF800000> : vector<8x2xf32>
    %226 = vector.multi_reduction <maximumf>, %225, %cst_97 [0] : vector<8x8x2xf32> to vector<8x2xf32>
    %227 = vector.shape_cast %226 : vector<8x2xf32> to vector<1x8x2xf32>
    %228 = vector.broadcast %227 : vector<1x8x2xf32> to vector<8x8x2xf32>
    %229 = arith.subf %225, %228 : vector<8x8x2xf32>
    %230 = math.exp %229 : vector<8x8x2xf32>
    %cst_98 = arith.constant dense<0.000000e+00> : vector<8x2xf32>
    %231 = vector.multi_reduction <add>, %230, %cst_98 [0] : vector<8x8x2xf32> to vector<8x2xf32>
    %232 = vector.shape_cast %231 : vector<8x2xf32> to vector<1x8x2xf32>
    %233 = vector.broadcast %232 : vector<1x8x2xf32> to vector<8x8x2xf32>
    %234 = arith.divf %230, %233 : vector<8x8x2xf32>
    %235 = vector.extract_strided_slice %234 {offsets = [0, 0, 0], sizes = [8, 8, 1], strides = [1, 1, 1]} : vector<8x8x2xf32> to vector<8x8x1xf32>
    %236 = vector.broadcast %235 : vector<8x8x1xf32> to vector<8x8x32xf32>
    %237 = arith.mulf %236, %200 : vector<8x8x32xf32>
    %cst_99 = arith.constant dense<0.000000e+00> : vector<8x32xf32>
    %238 = vector.multi_reduction <add>, %237, %cst_99 [0] : vector<8x8x32xf32> to vector<8x32xf32>
    %239 = vector.extract_strided_slice %234 {offsets = [0, 0, 1], sizes = [8, 8, 1], strides = [1, 1, 1]} : vector<8x8x2xf32> to vector<8x8x1xf32>
    %240 = vector.broadcast %239 : vector<8x8x1xf32> to vector<8x8x32xf32>
    %241 = arith.mulf %240, %200 : vector<8x8x32xf32>
    %cst_100 = arith.constant dense<0.000000e+00> : vector<8x32xf32>
    %242 = vector.multi_reduction <add>, %241, %cst_100 [0] : vector<8x8x32xf32> to vector<8x32xf32>
    %cst_101 = arith.constant 0.000000e+00 : f32
    %243 = vector.broadcast %cst_101 : f32 to vector<8x64xf32>
    %244 = tpu.concatenate %238, %242, %243 in 1 : vector<8x32xf32>, vector<8x32xf32>, vector<8x64xf32> -> vector<8x128xf32>
    %c0_102 = arith.constant 0 : index
    %c0_103 = arith.constant 0 : index
    %245 = vector.load %arg9[%c0_102, %c0_103] : memref<8x128xf32, #tpu.memory_space<vmem>>, vector<8x128xf32>
    tpu.vector_store %arg9[%c0_102, %c0_103], %244 {strides = array<i32>} : memref<8x128xf32, #tpu.memory_space<vmem>>, vector<8x128xf32>,
    return
  }
  func.func @transform_0(%arg0: i32) -> (i32, i32, i32, i32) {
    %c0_i32 = arith.constant 0 : i32
    %c0_i32_0 = arith.constant 0 : i32
    %c0_i32_1 = arith.constant 0 : i32
    %c0_i32_2 = arith.constant 0 : i32
    return %arg0, %c0_i32, %c0_i32_0, %c0_i32_1 : i32, i32, i32, i32
  }
  func.func @transform_1(%arg0: i32) -> (i32, i32) {
    %c0_i32 = arith.constant 0 : i32
    %c0_i32_0 = arith.constant 0 : i32
    %c0_i32_1 = arith.constant 0 : i32
    return %c0_i32, %c0_i32_0 : i32, i32
  }
  func.func @transform_2(%arg0: i32) -> (i32, i32) {
    %c0_i32 = arith.constant 0 : i32
    %c0_i32_0 = arith.constant 0 : i32
    %c0_i32_1 = arith.constant 0 : i32
    return %c0_i32, %c0_i32_0 : i32, i32
  }
  func.func @transform_3(%arg0: i32) -> (i32, i32) {
    %c0_i32 = arith.constant 0 : i32
    %c0_i32_0 = arith.constant 0 : i32
    %c0_i32_1 = arith.constant 0 : i32
    return %c0_i32, %c0_i32_0 : i32, i32
  }
  func.func @transform_4(%arg0: i32) -> (i32, i32) {
    %c0_i32 = arith.constant 0 : i32
    %c0_i32_0 = arith.constant 0 : i32
    %c0_i32_1 = arith.constant 0 : i32
    return %c0_i32, %c0_i32_0 : i32, i32
  }
  func.func @transform_5(%arg0: i32) -> (i32, i32) {
    %c0_i32 = arith.constant 0 : i32
    %c0_i32_0 = arith.constant 0 : i32
    %c0_i32_1 = arith.constant 0 : i32
    return %c0_i32, %c0_i32_0 : i32, i32
  }
  func.func @transform_6(%arg0: i32) -> (i32, i32) {
    %c0_i32 = arith.constant 0 : i32
    %c0_i32_0 = arith.constant 0 : i32
    %c0_i32_1 = arith.constant 0 : i32
    return %c0_i32, %c0_i32_0 : i32, i32
  }
  func.func @transform_7(%arg0: i32) -> (i32, i32) {
    %c0_i32 = arith.constant 0 : i32
    %c0_i32_0 = arith.constant 0 : i32
    %c0_i32_1 = arith.constant 0 : i32
    return %c0_i32, %c0_i32_0 : i32, i32
  }
  func.func @transform_8(%arg0: i32) -> (i32, i32) {
    %c0_i32 = arith.constant 0 : i32
    %c0_i32_0 = arith.constant 0 : i32
    return %arg0, %c0_i32 : i32, i32
  }
}

</mosaic_0001>

<bundles_post_ra>
// kernel: tpu_custom_call.1
= control target key start
LH: loop header
LB: loop body
LE: loop exit
PB: predicated region body
PF: predicated region fallthrough
CT: control target
= control target key end

     0   :  { %vm31_vm0 = vcmask 261120   ;;  %v1930_v3 = vmov 0.0   ;;  %vm1931_vm1 = vmmov 0   ;;  %s2406_s0 = inlined_call_operand.vmem [shape: bf16[1,8,8,32], index: 0, kind: input, shape index: {}]   ;;  %s2407_s1 = inlined_call_operand.vmem [shape: bf16[32,128], index: 1, kind: input, shape index: {}]   ;;  %s2408_s2 = inlined_call_operand.vmem [shape: bf16[32,128], index: 2, kind: input, shape index: {}]   ;;  %s2409_s3 = inlined_call_operand.vmem [shape: f32[1,128], index: 3, kind: input, shape index: {}]   ;;  %s2410_s4 = inlined_call_operand.vmem [shape: bf16[96,64], index: 4, kind: input, shape index: {}]   ;;  %s2411_s5 = inlined_call_operand.vmem [shape: f32[1,64], index: 5, kind: input, shape index: {}]   ;;  %s2412_s6 = inlined_call_operand.vmem [shape: bf16[192,2], index: 6, kind: input, shape index: {}]   ;;  %s2413_s7 = inlined_call_operand.vmem [shape: f32[1,2], index: 7, kind: input, shape index: {}]   ;;  %s2414_s8 = inlined_call_operand.hbm [shape: f32[8,128], index: 8, kind: output, shape index: {}]  }
   0x1   :  { %v1798_v0 = vld [vmem:[%s2407_s1] sm:$0xff]   ;;  %v1799_v1 = vld [vmem:[%s2407_s1 + $0x8] sm:$0xff]   ;;  %32 = vst.msk [vmem:[#allocation3] sm:$0xff] %vm31_vm0, %v1930_v3  ;;  %34 = vst.msk [vmem:[#allocation3 + $0x48] sm:$0xff] %vm31_vm0, %v1930_v3  ;;  %1666 = vmatprep.subr.bf16.mxu1 %v1930_v3  ;;  %1670 = vmatprep.mubr.msk.bf16.mxu1 %vm1931_vm1, %v1930_v3 }
   0x2   :  { %1630 = vmatprep.subr.bf16.mxu0 %v1798_v0  ;;  %v1800_v2 = vld [vmem:[%s2406_s0] sm:$0xff]   ;;  %v1801_v5 = vld [vmem:[%s2406_s0 + $0x8] sm:$0xff]   ;;  %v1803_v6 = vld [vmem:[%s2406_s0 + $0x10] sm:$0xff]  }
   0x3   :  { %1631 = vmatpush3.bf16.msra.mxu0 %v1798_v0  ;;  %1634 = vmatprep.mubr.msk.bf16.mxu0 %vm31_vm0, %v1800_v2  ;;  %v2002_v4 = vld [vmem:[%s2408_s2] sm:$0xff]   ;;  %v2014_v7 = vld [vmem:[%s2408_s2 + $0x8] sm:$0xff]   ;;  %v1804_v8 = vld [vmem:[%s2406_s0 + $0x18] sm:$0xff]  }
   0x4   :  { %1632 = vmatprep.subr.bf16.mxu0 %v1799_v1  ;;  %1667 = vmatpush3.bf16.msra.mxu1 %v2002_v4 }
   0x5   :  { %1668 = vmatprep.subr.bf16.mxu1 %v1930_v3 }
   0x7   :  { %1633 = vmatpush3.bf16.msra.mxu0 %v1799_v1 }
   0x8   :  { %1642 = vmatprep.subr.bf16.mxu0 %v1930_v3  ;;  %1669 = vmatpush3.bf16.msra.mxu1 %v2014_v7 }
   0x9   :  { %1682 = vmatprep.subr.bf16.mxu1 %v1930_v3 }
   0xa   :  { %1635 = vmatmul.mubr.msk.bf16.vlgmr.msra.gmra.mrb[0].mxu0 %vm31_vm0, %v1801_v5 }
   0xb   :  { %1643 = vmatpush3.bf16.msra.mxu0 %v2002_v4  ;;  %1638 = vmatprep.mubr.msk.bf16.mxu0 %vm31_vm0, %v1803_v6 }
   0xc   :  { %1644 = vmatprep.subr.bf16.mxu0 %v1930_v3 }
   0xf   :  { %1645 = vmatpush3.bf16.msra.mxu0 %v2014_v7 }
  0x10   :  { %1650 = vmatprep.subr.bf16.mxu0 %v1930_v3 }
  0x12   :  { %1639 = vmatmul.mubr.msk.bf16.gmra.mrb[4].mxu0 %vm31_vm0, %v1804_v8 }
  0x13   :  { %1646 = vmatprep.mubr.msk.bf16.mxu0 %vm1931_vm1, %v1930_v3 }
  0x14   :  { %13 = vsyncpa [#allocation6], 0  ;;  %v1932_v9 = vmov 0   ;;  %v1534_v10 = vld [vmem:[%s2409_s3] ss:$0 sm:$0xff]  ;;  %s1933_s3 = smov 32  }
  0x15   :  { %s1934_s20 = smov 64   ;;  %vm35_vm2 = vcmask 523264   ;;  %vm983_vm3 = vcmask 785408   ;;  %vm1331_vm4 = vcmask 15360  }
  0x16   :  { %36 = vst.msk [vmem:[#allocation4] sm:$0xff] %vm35_vm2, %v1930_v3  ;;  %38 = vst.msk [vmem:[#allocation4 + $0x48] sm:$0xff] %vm35_vm2, %v1930_v3 }
  0x1a   :  { %1647 = vmatmul.mubr.bf16.vlgmr.msra.gmra.mrb[8].mxu0 %v1932_v9 }
  0x1b   :  { %1651 = vmatpush3.bf16.msra.mxu0 %v2002_v4  ;;  %1654 = vmatprep.mubr.msk.bf16.mxu0 %vm1931_vm1, %v1930_v3 }
  0x1c   :  { %1652 = vmatprep.subr.bf16.mxu0 %v1930_v3 }
  0x1f   :  { %1653 = vmatpush3.bf16.msra.mxu0 %v2014_v7 }
  0x20   :  { %1658 = vmatprep.subr.bf16.mxu0 %v1930_v3 }
  0xdd   :  { %v1636_v11 = vpop.f32.mrb[0].mxu0 }
  0xde   :  { %v2042_v12 = vadd.f32 %v1636_v11, %v1534_v10  ;;  %v140_v13 = vpop.f32.mrb[1].mxu0 }
  0xdf   :  { %v1637_v14 = vpop.f32.mrb[2].mxu0  ;;  %v141_v26 = vadd.f32 %v1534_v10, %v140_v13 }
  0xe0   :  { %v2044_v15 = vadd.f32 %v1637_v14, %v1534_v10  ;;  %v143_v16 = vpop.f32.mrb[3].mxu0 }
  0xe1   :  { %v144_v17 = vadd.f32 %v1534_v10, %v143_v16 }
  0xe5   :  { %v1640_v18 = vpop.f32.mrb[4].mxu0 }
  0xe6   :  { %v2046_v19 = vadd.f32 %v1640_v18, %v1534_v10  ;;  %v156_v20 = vpop.f32.mrb[5].mxu0 }
  0xe7   :  { %v2048_v21 = vadd.f32 %v1534_v10, %v156_v20  ;;  %v1641_v22 = vpop.f32.mrb[6].mxu0 }
  0xe8   :  { %v2050_v23 = vadd.f32 %v1641_v22, %v1534_v10  ;;  %v159_v24 = vpop.f32.mrb[7].mxu0 }
  0xe9   :  { %v2052_v25 = vadd.f32 %v1534_v10, %v159_v24 }
  0xed   :  { %v229_v27 = vpop.f32.mrb[8].mxu0 }
  0xee   :  { %v235_v28 = vadd.f32 %v229_v27, %v141_v26  ;;  %v1648_v29 = vpop.f32.mrb[9].mxu0 }
  0xef   :  { %v232_v30 = vpop.f32.mrb[10].mxu0 }
  0xf0   :  { %1824 = vtanh.f32 %v235_v28  ;;  %v1649_v31 = vpop.f32.mrb[11].mxu0  ;;  %v1547_v33 = vmul.f32 -1.442695, %v235_v28 }
  0xf2   :  { %1826 = vpow2.f32 %v1547_v33 }
  0xfa   :  { %v1825_v32 = vpop.eup %1824 }
  0xfb   :  { %245 = vrot.lane.b32.xlu0 %v1825_v32, %s1933_s3 }
  0xfc   :  { %v1827_v34 = vpop.eup %1826 }
  0xfd   :  { %v239_v35 = vadd.f32 1.0, %v1827_v34 }
  0xff   :  { %1828 = vrcp.f32 %v239_v35 }
 0x109   :  { %v1829_v36 = vpop.eup %1828 }
 0x10a   :  { %v243_v39 = vmul.f32 0.0, %v1829_v36 }
 0x16d   :  { %v246_v37 = vpop.permute.xlu0 %245 }
 0x16e   :  { %v248_v38 = vmul.f32 %v1829_v36, %v246_v37 }
 0x170   :  { %250 = vrot.lane.b32.xlu0 %v248_v38, %s1933_s3 }
 0x1e2   :  { %v251_v40 = vpop.permute.xlu0 %250 }
 0x1e3   :  { %v253_v41 = vadd.f32 %v251_v40, %v243_v39 }
 0x1e5   :  { %1830 = vtanh.f32 %v253_v41 }
 0x1ef   :  { %v1831_v42 = vpop.eup %1830 }
 0x1f0   :  { %256 = vrot.lane.b32.xlu1 %v1831_v42, %s1933_s3 }
 0x262   :  { %v257_v43 = vpop.permute.xlu1 %256 }
 0x263   :  { %v2057_v44 = vmul.f32 %v1829_v36, %v257_v43 }
 0x265   :  { %v262_v45 = vpack.c.bf16 %v2057_v44, %v2057_v44 }
 0x267   :  { %264 = vrot.lane.b32.xlu1 %v262_v45, %s1934_s20 }
 0x2d9   :  { %v265_v46 = vpop.permute.xlu1 %264 }
 0x2da   :  { %1655 = vmatmul.mubr.msk.bf16.vlgmr.msra.gmra.mrb[12].mxu0 %vm31_vm0, %v265_v46 }
 0x2db   :  { %1659 = vmatpush3.bf16.msra.mxu0 %v2002_v4  ;;  %1662 = vmatprep.mubr.msk.bf16.mxu0 %vm1931_vm1, %v1930_v3 }
 0x2dc   :  { %1660 = vmatprep.subr.bf16.mxu0 %v1930_v3 }
 0x2df   :  { %1661 = vmatpush3.bf16.msra.mxu0 %v2014_v7 }
 0x2e0   :  { %1674 = vmatprep.subr.bf16.mxu0 %v1930_v3 }
 0x3ad   :  { %v303_v47 = vpop.f32.mrb[12].mxu0 }
 0x3ae   :  { %v309_v48 = vadd.f32 %v303_v47, %v144_v17  ;;  %v1656_v49 = vpop.f32.mrb[13].mxu0 }
 0x3af   :  { %v306_v50 = vpop.f32.mrb[14].mxu0 }
 0x3b0   :  { %1832 = vtanh.f32 %v309_v48  ;;  %v1657_v51 = vpop.f32.mrb[15].mxu0  ;;  %v1549_v53 = vmul.f32 -1.442695, %v309_v48 }
 0x3b2   :  { %1834 = vpow2.f32 %v1549_v53 }
 0x3ba   :  { %v1833_v52 = vpop.eup %1832 }
 0x3bb   :  { %319 = vrot.lane.b32.xlu0 %v1833_v52, %s1933_s3 }
 0x3bc   :  { %v1835_v54 = vpop.eup %1834 }
 0x3bd   :  { %v313_v55 = vadd.f32 1.0, %v1835_v54 }
 0x3bf   :  { %1836 = vrcp.f32 %v313_v55 }
 0x3c9   :  { %v1837_v56 = vpop.eup %1836 }
 0x3ca   :  { %v317_v59 = vmul.f32 %v1837_v56, %v253_v41 }
 0x42d   :  { %v320_v57 = vpop.permute.xlu0 %319 }
 0x42e   :  { %v322_v58 = vmul.f32 %v1837_v56, %v320_v57 }
 0x430   :  { %324 = vrot.lane.b32.xlu1 %v322_v58, %s1933_s3 }
 0x4a2   :  { %v325_v60 = vpop.permute.xlu1 %324 }
 0x4a3   :  { %v327_v61 = vadd.f32 %v325_v60, %v317_v59 }
 0x4a5   :  { %1838 = vtanh.f32 %v327_v61 }
 0x4af   :  { %v1839_v62 = vpop.eup %1838 }
 0x4b0   :  { %330 = vrot.lane.b32.xlu0 %v1839_v62, %s1933_s3 }
 0x522   :  { %v331_v63 = vpop.permute.xlu0 %330 }
 0x523   :  { %v2072_v0 = vmul.f32 %v1837_v56, %v331_v63 }
 0x525   :  { %v336_v1 = vpack.c.bf16 %v2072_v0, %v2072_v0 }
 0x527   :  { %338 = vrot.lane.b32.xlu1 %v336_v1, %s1934_s20 }
 0x599   :  { %v339_v2 = vpop.permute.xlu1 %338 }
 0x59a   :  { %1663 = vmatmul.mubr.msk.bf16.vlgmr.msra.gmra.mrb[16].mxu0 %vm31_vm0, %v339_v2 }
 0x59b   :  { %1675 = vmatpush3.bf16.msra.mxu0 %v2002_v4  ;;  %1678 = vmatprep.mubr.msk.bf16.mxu0 %vm1931_vm1, %v1930_v3 }
 0x59c   :  { %1676 = vmatprep.subr.bf16.mxu0 %v1930_v3 }
 0x59f   :  { %1677 = vmatpush3.bf16.msra.mxu0 %v2014_v7 }
 0x5a0   :  { %1690 = vmatprep.subr.bf16.mxu0 %v1930_v3 }
 0x66d   :  { %v377_v5 = vpop.f32.mrb[16].mxu0 }
 0x66e   :  { %v383_v6 = vadd.f32 %v377_v5, %v2042_v12  ;;  %v1664_v8 = vpop.f32.mrb[17].mxu0 }
 0x66f   :  { %v380_v10 = vpop.f32.mrb[18].mxu0 }
 0x670   :  { %1840 = vtanh.f32 %v383_v6  ;;  %v1665_v11 = vpop.f32.mrb[19].mxu0  ;;  %v1551_v14 = vmul.f32 -1.442695, %v383_v6 }
 0x672   :  { %1842 = vpow2.f32 %v1551_v14 }
 0x67a   :  { %v1841_v13 = vpop.eup %1840 }
 0x67b   :  { %393 = vrot.lane.b32.xlu0 %v1841_v13, %s1933_s3 }
 0x67c   :  { %v1843_v16 = vpop.eup %1842 }
 0x67d   :  { %v387_v17 = vadd.f32 1.0, %v1843_v16 }
 0x67f   :  { %1844 = vrcp.f32 %v387_v17 }
 0x689   :  { %v1845_v18 = vpop.eup %1844 }
 0x68a   :  { %v391_v24 = vmul.f32 %v1845_v18, %v327_v61 }
 0x6ed   :  { %v394_v20 = vpop.permute.xlu0 %393 }
 0x6ee   :  { %v396_v22 = vmul.f32 %v1845_v18, %v394_v20 }
 0x6f0   :  { %398 = vrot.lane.b32.xlu1 %v396_v22, %s1933_s3 }
 0x762   :  { %v399_v26 = vpop.permute.xlu1 %398 }
 0x763   :  { %v401_v12 = vadd.f32 %v399_v26, %v391_v24 }
 0x765   :  { %1846 = vtanh.f32 %v401_v12 }
 0x76f   :  { %v1847_v27 = vpop.eup %1846 }
 0x770   :  { %404 = vrot.lane.b32.xlu0 %v1847_v27, %s1933_s3 }
 0x7e2   :  { %v405_v28 = vpop.permute.xlu0 %404 }
 0x7e3   :  { %v2088_v29 = vmul.f32 %v1845_v18, %v405_v28 }
 0x7e5   :  { %v410_v30 = vpack.c.bf16 %v2088_v29, %v2088_v29 }
 0x7e7   :  { %412 = vrot.lane.b32.xlu1 %v410_v30, %s1934_s20 }
 0x859   :  { %v413_v31 = vpop.permute.xlu1 %412 }
 0x85a   :  { %1671 = vmatmul.mubr.msk.bf16.vlgmr.msra.gmra.mrb[0].mxu1 %vm31_vm0, %v413_v31 }
 0x85b   :  { %1683 = vmatpush3.bf16.msra.mxu1 %v2002_v4  ;;  %1686 = vmatprep.mubr.msk.bf16.mxu1 %vm1931_vm1, %v1930_v3 }
 0x85c   :  { %1684 = vmatprep.subr.bf16.mxu1 %v1930_v3 }
 0x85f   :  { %1685 = vmatpush3.bf16.msra.mxu1 %v2014_v7 }
 0x860   :  { %1698 = vmatprep.subr.bf16.mxu1 %v1930_v3 }
 0x92d   :  { %v451_v32 = vpop.f32.mrb[0].mxu1 }
 0x92e   :  { %v457_v33 = vadd.f32 %v451_v32, %v2044_v15  ;;  %v1672_v34 = vpop.f32.mrb[1].mxu1 }
 0x92f   :  { %v454_v35 = vpop.f32.mrb[2].mxu1 }
 0x930   :  { %1848 = vtanh.f32 %v457_v33  ;;  %v1673_v36 = vpop.f32.mrb[3].mxu1  ;;  %v1553_v38 = vmul.f32 -1.442695, %v457_v33 }
 0x932   :  { %1850 = vpow2.f32 %v1553_v38 }
 0x93a   :  { %v1849_v37 = vpop.eup %1848 }
 0x93b   :  { %467 = vrot.lane.b32.xlu0 %v1849_v37, %s1933_s3 }
 0x93c   :  { %v1851_v39 = vpop.eup %1850 }
 0x93d   :  { %v461_v40 = vadd.f32 1.0, %v1851_v39 }
 0x93f   :  { %1852 = vrcp.f32 %v461_v40 }
 0x949   :  { %v1853_v41 = vpop.eup %1852 }
 0x94a   :  { %v465_v45 = vmul.f32 %v1853_v41, %v401_v12 }
 0x9ad   :  { %v468_v42 = vpop.permute.xlu0 %467 }
 0x9ae   :  { %v470_v43 = vmul.f32 %v1853_v41, %v468_v42 }
 0x9b0   :  { %472 = vrot.lane.b32.xlu1 %v470_v43, %s1933_s3 }
 0xa22   :  { %v473_v46 = vpop.permute.xlu1 %472 }
 0xa23   :  { %v475_v15 = vadd.f32 %v473_v46, %v465_v45 }
 0xa25   :  { %1854 = vtanh.f32 %v475_v15 }
 0xa2f   :  { %v1855_v47 = vpop.eup %1854 }
 0xa30   :  { %478 = vrot.lane.b32.xlu0 %v1855_v47, %s1933_s3 }
 0xaa2   :  { %v479_v48 = vpop.permute.xlu0 %478 }
 0xaa3   :  { %v2104_v49 = vmul.f32 %v1853_v41, %v479_v48 }
 0xaa5   :  { %v484_v50 = vpack.c.bf16 %v2104_v49, %v2104_v49 }
 0xaa7   :  { %486 = vrot.lane.b32.xlu1 %v484_v50, %s1934_s20 }
 0xb19   :  { %v487_v51 = vpop.permute.xlu1 %486 }
 0xb1a   :  { %1679 = vmatmul.mubr.msk.bf16.vlgmr.msra.gmra.mrb[20].mxu0 %vm31_vm0, %v487_v51 }
 0xb1b   :  { %1691 = vmatpush3.bf16.msra.mxu0 %v2002_v4  ;;  %1694 = vmatprep.mubr.msk.bf16.mxu0 %vm1931_vm1, %v1930_v3 }
 0xb1c   :  { %1692 = vmatprep.subr.bf16.mxu0 %v1930_v3 }
 0xb1f   :  { %1693 = vmatpush3.bf16.msra.mxu0 %v2014_v7 }
 0xbed   :  { %v525_v52 = vpop.f32.mrb[20].mxu0 }
 0xbee   :  { %v531_v53 = vadd.f32 %v525_v52, %v2048_v21  ;;  %v1680_v54 = vpop.f32.mrb[21].mxu0 }
 0xbef   :  { %v528_v55 = vpop.f32.mrb[22].mxu0 }
 0xbf0   :  { %1856 = vtanh.f32 %v531_v53  ;;  %v1681_v56 = vpop.f32.mrb[23].mxu0  ;;  %v1555_v58 = vmul.f32 -1.442695, %v531_v53 }
 0xbf2   :  { %1858 = vpow2.f32 %v1555_v58 }
 0xbfa   :  { %v1857_v57 = vpop.eup %1856 }
 0xbfb   :  { %541 = vrot.lane.b32.xlu0 %v1857_v57, %s1933_s3 }
 0xbfc   :  { %v1859_v59 = vpop.eup %1858 }
 0xbfd   :  { %v535_v60 = vadd.f32 1.0, %v1859_v59 }
 0xbff   :  { %1860 = vrcp.f32 %v535_v60 }
 0xc09   :  { %v1861_v61 = vpop.eup %1860 }
 0xc0a   :  { %v539_v1 = vmul.f32 %v1861_v61, %v475_v15 }
 0xc6d   :  { %v542_v62 = vpop.permute.xlu0 %541 }
 0xc6e   :  { %v544_v63 = vmul.f32 %v1861_v61, %v542_v62 }
 0xc70   :  { %546 = vrot.lane.b32.xlu1 %v544_v63, %s1933_s3 }
 0xce2   :  { %v547_v2 = vpop.permute.xlu1 %546 }
 0xce3   :  { %v549_v21 = vadd.f32 %v547_v2, %v539_v1 }
 0xce5   :  { %1862 = vtanh.f32 %v549_v21 }
 0xcef   :  { %v1863_v5 = vpop.eup %1862 }
 0xcf0   :  { %552 = vrot.lane.b32.xlu0 %v1863_v5, %s1933_s3 }
 0xd62   :  { %v553_v6 = vpop.permute.xlu0 %552 }
 0xd63   :  { %v2119_v8 = vmul.f32 %v1861_v61, %v553_v6 }
 0xd65   :  { %v558_v10 = vpack.c.bf16 %v2119_v8, %v2119_v8 }
 0xd67   :  { %560 = vrot.lane.b32.xlu1 %v558_v10, %s1934_s20 }
 0xdd9   :  { %v561_v11 = vpop.permute.xlu1 %560 }
 0xdda   :  { %1687 = vmatmul.mubr.msk.bf16.vlgmr.msra.gmra.mrb[4].mxu1 %vm31_vm0, %v561_v11 }
 0xddb   :  { %1699 = vmatpush3.bf16.msra.mxu1 %v2002_v4  ;;  %1702 = vmatprep.mubr.msk.bf16.mxu1 %vm1931_vm1, %v1930_v3 }
 0xddc   :  { %1700 = vmatprep.subr.bf16.mxu1 %v1930_v3 }
 0xddf   :  { %1701 = vmatpush3.bf16.msra.mxu1 %v2014_v7 }
 0xde0   :  { %1266 = vmatprep.subr.bf16.mxu1 %v1932_v9 }
 0xead   :  { %v599_v13 = vpop.f32.mrb[4].mxu1 }
 0xeae   :  { %v605_v14 = vadd.f32 %v599_v13, %v2052_v25  ;;  %v1688_v16 = vpop.f32.mrb[5].mxu1 }
 0xeaf   :  { %v602_v17 = vpop.f32.mrb[6].mxu1 }
 0xeb0   :  { %1864 = vtanh.f32 %v605_v14  ;;  %v1689_v18 = vpop.f32.mrb[7].mxu1  ;;  %v1557_v4 = vmul.f32 -1.442695, %v605_v14  ;;  %v1807_v14 = vld [vmem:[%s2410_s4 + $0x8] sm:$0xff]   ;;  %v1809_v17 = vld [vmem:[%s2410_s4 + $0x18] sm:$0xff]  }
 0xeb2   :  { %1866 = vpow2.f32 %v1557_v4 }
 0xeba   :  { %v1865_v20 = vpop.eup %1864 }
 0xebb   :  { %615 = vrot.lane.b32.xlu0 %v1865_v20, %s1933_s3  ;;  %v1810_v20 = vld [vmem:[%s2410_s4 + $0x20] sm:$0xff]  }
 0xebc   :  { %v1867_v22 = vpop.eup %1866 }
 0xebd   :  { %v609_v24 = vadd.f32 1.0, %v1867_v22  ;;  %v1811_v22 = vld [vmem:[%s2410_s4 + $0x28] sm:$0xff]  }
 0xebf   :  { %1868 = vrcp.f32 %v609_v24 }
 0xec9   :  { %v1869_v26 = vpop.eup %1868 }
 0xeca   :  { %v613_v27 = vmul.f32 %v1869_v26, %v549_v21 }
 0xf2d   :  { %v616_v12 = vpop.permute.xlu0 %615 }
 0xf2e   :  { %v618_v7 = vmul.f32 %v1869_v26, %v616_v12 }
 0xf30   :  { %620 = vrot.lane.b32.xlu1 %v618_v7, %s1933_s3 }
 0xfa2   :  { %v621_v28 = vpop.permute.xlu1 %620 }
 0xfa3   :  { %v623_v25 = vadd.f32 %v621_v28, %v613_v27 }
 0xfa5   :  { %1870 = vtanh.f32 %v623_v25 }
 0xfaf   :  { %v1871_v30 = vpop.eup %1870 }
 0xfb0   :  { %626 = vrot.lane.b32.xlu0 %v1871_v30, %s1933_s3 }
0x1022   :  { %v627_v31 = vpop.permute.xlu0 %626 }
0x1023   :  { %v2135_v32 = vmul.f32 %v1869_v26, %v627_v31 }
0x1025   :  { %v632_v33 = vpack.c.bf16 %v2135_v32, %v2135_v32 }
0x1027   :  { %634 = vrot.lane.b32.xlu1 %v632_v33, %s1934_s20 }
0x1099   :  { %v635_v34 = vpop.permute.xlu1 %634 }
0x109a   :  { %1695 = vmatmul.mubr.msk.bf16.vlgmr.msra.gmra.mrb[24].mxu0 %vm31_vm0, %v635_v34 }
0x116d   :  { %v673_v35 = vpop.f32.mrb[24].mxu0 }
0x116e   :  { %v679_v36 = vadd.f32 %v673_v35, %v2046_v19  ;;  %v1696_v37 = vpop.f32.mrb[25].mxu0 }
0x116f   :  { %v676_v38 = vpop.f32.mrb[26].mxu0 }
0x1170   :  { %1872 = vtanh.f32 %v679_v36  ;;  %v1697_v39 = vpop.f32.mrb[27].mxu0  ;;  %v1559_v41 = vmul.f32 -1.442695, %v679_v36 }
0x1171   :  { %v843_v39 = vld [vmem:[#allocation3 + $0x48] sm:$0xff] }
0x1172   :  { %1874 = vpow2.f32 %v1559_v41 }
0x117a   :  { %v1873_v40 = vpop.eup %1872 }
0x117b   :  { %689 = vrot.lane.b32.xlu0 %v1873_v40, %s1933_s3 }
0x117c   :  { %v1875_v42 = vpop.eup %1874 }
0x117d   :  { %v683_v43 = vadd.f32 1.0, %v1875_v42 }
0x117f   :  { %1876 = vrcp.f32 %v683_v43 }
0x1189   :  { %v1877_v45 = vpop.eup %1876 }
0x118a   :  { %v687_v47 = vmul.f32 %v1877_v45, %v623_v25 }
0x11ed   :  { %v690_v46 = vpop.permute.xlu0 %689 }
0x11ee   :  { %v692_v15 = vmul.f32 %v1877_v45, %v690_v46 }
0x11f0   :  { %694 = vrot.lane.b32.xlu1 %v692_v15, %s1933_s3 }
0x1262   :  { %v695_v48 = vpop.permute.xlu1 %694 }
0x1263   :  { %v697_v19 = vadd.f32 %v695_v48, %v687_v47 }
0x1265   :  { %1878 = vtanh.f32 %v697_v19 }
0x126f   :  { %v1879_v50 = vpop.eup %1878 }
0x1270   :  { %700 = vrot.lane.b32.xlu0 %v1879_v50, %s1933_s3 }
0x12e2   :  { %v701_v51 = vpop.permute.xlu0 %700 }
0x12e3   :  { %v703_v52 = vmul.f32 %v1877_v45, %v701_v51  ;;  %v819_v45 = vld [vmem:[#allocation3] sm:$0xff] }
0x12e5   :  { %v706_v53 = vpack.c.bf16 %v703_v52, %v703_v52 }
0x12e7   :  { %708 = vrot.lane.b32.xlu1 %v706_v53, %s1934_s20 }
0x1359   :  { %v709_v54 = vpop.permute.xlu1 %708 }
0x135a   :  { %1703 = vmatmul.mubr.msk.bf16.vlgmr.msra.gmra.mrb[8].mxu1 %vm31_vm0, %v709_v54 }
0x142d   :  { %v747_v55 = vpop.f32.mrb[8].mxu1 }
0x142e   :  { %v753_v56 = vadd.f32 %v747_v55, %v2050_v23  ;;  %v1704_v57 = vpop.f32.mrb[9].mxu1 }
0x142f   :  { %v750_v58 = vpop.f32.mrb[10].mxu1 }
0x1430   :  { %1880 = vtanh.f32 %v753_v56  ;;  %v1705_v59 = vpop.f32.mrb[11].mxu1  ;;  %v1561_v61 = vmul.f32 -1.442695, %v753_v56 }
0x1432   :  { %1882 = vpow2.f32 %v1561_v61 }
0x143a   :  { %v1881_v60 = vpop.eup %1880 }
0x143b   :  { %763 = vrot.lane.b32.xlu0 %v1881_v60, %s1933_s3 }
0x143c   :  { %v1883_v62 = vpop.eup %1882 }
0x143d   :  { %v757_v63 = vadd.f32 1.0, %v1883_v62 }
0x143f   :  { %1884 = vrcp.f32 %v757_v63 }
0x1449   :  { %v1885_v1 = vpop.eup %1884 }
0x144a   :  { %v761_v23 = vmul.f32 %v1885_v1, %v697_v19 }
0x14ad   :  { %v764_v2 = vpop.permute.xlu0 %763 }
0x14ae   :  { %v766_v21 = vmul.f32 %v1885_v1, %v764_v2 }
0x14b0   :  { %768 = vrot.lane.b32.xlu1 %v766_v21, %s1933_s3 }
0x14b4   :  { %786 = vrot.lane.b32.xlu1 %v2057_v44, %s1934_s20 }
0x14b8   :  { %790 = vrot.lane.b32.xlu1 %v2088_v29, %s1934_s20 }
0x14bc   :  { %794 = vrot.lane.b32.xlu1 %v2119_v8, %s1934_s20  ;;  %v1806_v8 = vld [vmem:[%s2410_s4] sm:$0xff]  }
0x14bd   :  { %1706 = vmatprep.subr.bf16.mxu0 %v1806_v8 }
0x14be   :  { %1707 = vmatpush3.bf16.msra.mxu0 %v1806_v8 }
0x14bf   :  { %1708 = vmatprep.subr.bf16.mxu0 %v1807_v14 }
0x14c0   :  { %798 = vrot.lane.b32.xlu1 %v703_v52, %s1934_s20 }
0x14c2   :  { %1709 = vmatpush3.bf16.msra.mxu0 %v1807_v14 }
0x1522   :  { %v769_v5 = vpop.permute.xlu1 %768 }
0x1523   :  { %v771_v6 = vadd.f32 %v769_v5, %v761_v23 }
0x1525   :  { %1886 = vtanh.f32 %v771_v6 }
0x1526   :  { %v787_v10 = vpop.permute.xlu1 %786 }
0x1527   :  { %811 = vst.msk [vmem:[#allocation3 + $0x8] sm:$0xff] %vm31_vm0, %v787_v10 }
0x152a   :  { %v791_v11 = vpop.permute.xlu1 %790 }
0x152b   :  { %813 = vst.msk [vmem:[#allocation3 + $0x18] sm:$0xff] %vm31_vm0, %v791_v11 }
0x152e   :  { %v795_v13 = vpop.permute.xlu1 %794  ;;  %v2193_v26 = vld [vmem:[#allocation3 + $0x8] sm:$0xff] }
0x152f   :  { %v1887_v44 = vpop.eup %1886  ;;  %815 = vst.msk [vmem:[#allocation3 + $0x28] sm:$0xff] %vm31_vm0, %v795_v13 }
0x1530   :  { %774 = vrot.lane.b32.xlu0 %v1887_v44, %s1933_s3 }
0x1532   :  { %v799_v29 = vpop.permute.xlu1 %798  ;;  %v2201_v7 = vld [vmem:[#allocation3 + $0x18] sm:$0xff] }
0x1533   :  { %817 = vst.msk [vmem:[#allocation3 + $0x38] sm:$0xff] %vm31_vm0, %v799_v29 }
0x1534   :  { %788 = vrot.lane.b32.xlu0 %v2072_v0, %s1934_s20  ;;  %v1808_v0 = vld [vmem:[%s2410_s4 + $0x10] sm:$0xff]  }
0x1535   :  { %1710 = vmatprep.subr.bf16.mxu0 %v1808_v0 }
0x1536   :  { %1711 = vmatpush3.bf16.msra.mxu0 %v1808_v0  ;;  %v2211_v30 = vld [vmem:[#allocation3 + $0x28] sm:$0xff] }
0x1537   :  { %1712 = vmatprep.subr.bf16.mxu0 %v1809_v17 }
0x1538   :  { %792 = vrot.lane.b32.xlu0 %v2104_v49, %s1934_s20 }
0x153a   :  { %1713 = vmatpush3.bf16.msra.mxu0 %v1809_v17  ;;  %v2221_v34 = vld [vmem:[#allocation3 + $0x38] sm:$0xff]  ;;  %v1813_v17 = vld [vmem:[%s2412_s6 + $0x8] sm:$0xff]  }
0x153b   :  { %1714 = vmatprep.subr.bf16.mxu0 %v1810_v20 }
0x153c   :  { %796 = vrot.lane.b32.xlu0 %v2135_v32, %s1934_s20 }
0x153e   :  { %1715 = vmatpush3.bf16.msra.mxu0 %v1810_v20 }
0x153f   :  { %1716 = vmatprep.subr.bf16.mxu0 %v1811_v22 }
0x1542   :  { %1717 = vmatpush3.bf16.msra.mxu0 %v1811_v22 }
0x15a2   :  { %v775_v49 = vpop.permute.xlu0 %774 }
0x15a3   :  { %v777_v16 = vmul.f32 %v1885_v1, %v775_v49  ;;  %v1812_v49 = vld [vmem:[%s2412_s6] sm:$0xff]  }
0x15a4   :  { %1267 = vmatpush1.bf16.msra.mxu1 %v1812_v49 }
0x15a5   :  { %800 = vrot.lane.b32.xlu0 %v777_v16, %s1934_s20  ;;  %1268 = vmatprep.subr.bf16.mxu1 %v1932_v9 }
0x15a6   :  { %v789_v18 = vpop.permute.xlu0 %788 }
0x15a7   :  { %812 = vst.msk [vmem:[#allocation3 + $0x10] sm:$0xff] %vm31_vm0, %v789_v18 }
0x15a8   :  { %1269 = vmatpush1.bf16.msra.mxu1 %v1813_v17 }
0x15a9   :  { %1270 = vmatprep.subr.bf16.mxu1 %v1932_v9 }
0x15aa   :  { %v793_v4 = vpop.permute.xlu0 %792 }
0x15ab   :  { %814 = vst.msk [vmem:[#allocation3 + $0x20] sm:$0xff] %vm31_vm0, %v793_v4 }
0x15ae   :  { %v797_v24 = vpop.permute.xlu0 %796  ;;  %v2195_v12 = vld [vmem:[#allocation3 + $0x10] sm:$0xff] }
0x15af   :  { %816 = vst.msk [vmem:[#allocation3 + $0x30] sm:$0xff] %vm31_vm0, %v797_v24  ;;  %v1733_v3 = vpack.i.bf16 %v2195_v12, %v2193_v26  ;;  %v1743_v28 = vpack.i.bf16 %v2201_v7, %v2195_v12 }
0x15b1   :  { %1734 = vrot.lane.b32.xlu1 %v1733_v3, %s1933_s3 }
0x15b2   :  { %v2203_v27 = vld [vmem:[#allocation3 + $0x20] sm:$0xff] }
0x15b3   :  { %v1738_v25 = vpack.i.bf16 %v2203_v27, %v2201_v7  ;;  %v1748_v32 = vpack.i.bf16 %v2211_v30, %v2203_v27 }
0x15b5   :  { %1744 = vrot.lane.b32.xlu1 %v1743_v28, %s1934_s20  ;;  %1739 = vrot.lane.b32.xlu0 %v1738_v25, %s1933_s3  ;;  %v1814_v25 = vld [vmem:[%s2412_s6 + $0x10] sm:$0xff]  }
0x15b6   :  { %v2213_v31 = vld [vmem:[#allocation3 + $0x30] sm:$0xff]  ;;  %1271 = vmatpush1.bf16.msra.mxu1 %v1814_v25 }
0x15b7   :  { %v1753_v33 = vpack.i.bf16 %v2213_v31, %v2211_v30  ;;  %v1758_v35 = vpack.i.bf16 %v2221_v34, %v2213_v31  ;;  %1272 = vmatprep.subr.bf16.mxu1 %v1932_v9 }
0x15b9   :  { %1749 = vrot.lane.b32.xlu0 %v1748_v32, %s1934_s20  ;;  %1754 = vrot.lane.b32.xlu1 %v1753_v33, %s1933_s3  ;;  %v1815_v32 = vld [vmem:[%s2412_s6 + $0x18] sm:$0xff]   ;;  %v1816_v33 = vld [vmem:[%s2412_s6 + $0x20] sm:$0xff]  }
0x15ba   :  { %1273 = vmatpush1.bf16.msra.mxu1 %v1815_v32 }
0x15bb   :  { %1274 = vmatprep.subr.bf16.mxu1 %v1932_v9 }
0x15bd   :  { %1759 = vrot.lane.b32.xlu1 %v1758_v35, %s1934_s20  ;;  %v1817_v35 = vld [vmem:[%s2412_s6 + $0x28] sm:$0xff]  }
0x15be   :  { %1275 = vmatpush1.bf16.msra.mxu1 %v1816_v33 }
0x15bf   :  { %1276 = vmatprep.subr.bf16.mxu1 %v1932_v9 }
0x15c2   :  { %1277 = vmatpush1.bf16.msra.mxu1 %v1817_v35 }
0x15c3   :  { %1278 = vmatprep.subr.bf16.mxu1 %v1932_v9 }
0x1617   :  { %v801_v36 = vpop.permute.xlu0 %800 }
0x1618   :  { %818 = vst.msk [vmem:[#allocation3 + $0x40] sm:$0xff] %vm31_vm0, %v801_v36  ;;  %v1818_v36 = vld [vmem:[%s2412_s6 + $0x30] sm:$0xff]  }
0x1619   :  { %1279 = vmatpush1.bf16.msra.mxu1 %v1818_v36 }
0x161a   :  { %1280 = vmatprep.subr.bf16.mxu1 %v1932_v9 }
0x161f   :  { %v2227_v37 = vld [vmem:[#allocation3 + $0x40] sm:$0xff] }
0x1620   :  { %v1763_v38 = vpack.i.bf16 %v2227_v37, %v2221_v34  ;;  %v1768_v41 = vpack.i.bf16 %v843_v39, %v2227_v37  ;;  %v1820_v39 = vld [vmem:[%s2412_s6 + $0x40] sm:$0xff]  }
0x1622   :  { %1764 = vrot.lane.b32.xlu0 %v1763_v38, %s1933_s3  ;;  %v1819_v38 = vld [vmem:[%s2412_s6 + $0x38] sm:$0xff]  }
0x1623   :  { %v1735_v40 = vpop.permute.xlu1 %1734  ;;  %1281 = vmatpush1.bf16.msra.mxu1 %v1819_v38 }
0x1624   :  { %v1737_v42 = vunpack.i.h.bf16 %v1735_v40  ;;  %v1736_v43 = vunpack.i.l.bf16 %v1735_v40  ;;  %1282 = vmatprep.subr.bf16.mxu1 %v1932_v9  ;;  %v1821_v40 = vld [vmem:[%s2412_s6 + $0x48] sm:$0xff]  }
0x1626   :  { %1769 = vrot.lane.b32.xlu0 %v1768_v41, %s1934_s20  ;;  %v909_v19 = vsel %vm31_vm0, %v2193_v26, %v1737_v42  ;;  %v908_v50 = vsel %vm31_vm0, %v819_v45, %v1736_v43  ;;  %v1562_v41 = vld [vmem:[%s2411_s5] ss:$0 sm:$0xff]  ;;  %v1822_v42 = vld [vmem:[%s2412_s6 + $0x50] sm:$0xff]  }
0x1627   :  { %v1745_v46 = vpop.permute.xlu1 %1744  ;;  %v1740_v15 = vpop.permute.xlu0 %1739  ;;  %1283 = vmatpush1.bf16.msra.mxu1 %v1820_v39 }
0x1628   :  { %v1747_v47 = vunpack.i.h.bf16 %v1745_v46  ;;  %v1746_v48 = vunpack.i.l.bf16 %v1745_v46  ;;  %v1742_v51 = vunpack.i.h.bf16 %v1740_v15  ;;  %v1741_v52 = vunpack.i.l.bf16 %v1740_v15  ;;  %1284 = vmatprep.subr.bf16.mxu1 %v1932_v9 }
0x162a   :  { %v916_v53 = vsel %vm35_vm2, %v908_v50, %v1746_v48  ;;  %v917_v54 = vsel %vm35_vm2, %v909_v19, %v1747_v47  ;;  %v911_v60 = vsel %vm31_vm0, %v2201_v7, %v1742_v51  ;;  %v910_v61 = vsel %vm31_vm0, %v2195_v12, %v1741_v52 }
0x162b   :  { %v924_v55 = vpack.c.bf16 %v917_v54, %v916_v53  ;;  %v1755_v56 = vpop.permute.xlu1 %1754  ;;  %v1750_v57 = vpop.permute.xlu0 %1749  ;;  %1285 = vmatpush1.bf16.msra.mxu1 %v1821_v40  ;;  %v1823_v54 = vld [vmem:[%s2412_s6 + $0x58] sm:$0xff]  }
0x162c   :  { %v1752_v58 = vunpack.i.h.bf16 %v1750_v57  ;;  %v1751_v59 = vunpack.i.l.bf16 %v1750_v57  ;;  %v1757_v62 = vunpack.i.h.bf16 %v1755_v56  ;;  %v1756_v63 = vunpack.i.l.bf16 %v1755_v56  ;;  %1286 = vmatprep.subr.bf16.mxu1 %v1932_v9 }
0x162d   :  { %1718 = vmatprep.mubr.msk.bf16.mxu0 %vm983_vm3, %v924_v55 }
0x162e   :  { %v918_v1 = vsel %vm35_vm2, %v910_v61, %v1751_v59  ;;  %v919_v2 = vsel %vm35_vm2, %v911_v60, %v1752_v58  ;;  %v913_v10 = vsel %vm31_vm0, %v2211_v30, %v1757_v62  ;;  %v912_v11 = vsel %vm31_vm0, %v2203_v27, %v1756_v63 }
0x162f   :  { %v925_v21 = vpack.c.bf16 %v919_v2, %v918_v1  ;;  %v1760_v23 = vpop.permute.xlu1 %1759  ;;  %1287 = vmatpush1.bf16.msra.mxu1 %v1822_v42 }
0x1630   :  { %v1762_v5 = vunpack.i.h.bf16 %v1760_v23  ;;  %v1761_v6 = vunpack.i.l.bf16 %v1760_v23  ;;  %1288 = vmatprep.subr.bf16.mxu1 %v1932_v9 }
0x1631   :  { %1719 = vmatmul.mubr.msk.bf16.vlgmr.msra.gmra.mrb[28].mxu0 %vm983_vm3, %v925_v21 }
0x1632   :  { %v920_v13 = vsel %vm35_vm2, %v912_v11, %v1761_v6  ;;  %v921_v44 = vsel %vm35_vm2, %v913_v10, %v1762_v5 }
0x1633   :  { %v926_v29 = vpack.c.bf16 %v921_v44, %v920_v13  ;;  %1289 = vmatpush1.bf16.msra.mxu1 %v1823_v54 }
0x1635   :  { %1722 = vmatprep.mubr.msk.bf16.mxu0 %vm983_vm3, %v926_v29 }
0x1694   :  { %v1765_v8 = vpop.permute.xlu0 %1764 }
0x1695   :  { %v1767_v14 = vunpack.i.h.bf16 %v1765_v8  ;;  %v1766_v0 = vunpack.i.l.bf16 %v1765_v8 }
0x1697   :  { %v915_v4 = vsel %vm31_vm0, %v2221_v34, %v1767_v14  ;;  %v914_v22 = vsel %vm31_vm0, %v2213_v31, %v1766_v0 }
0x1698   :  { %v1770_v16 = vpop.permute.xlu0 %1769 }
0x1699   :  { %v1772_v18 = vunpack.i.h.bf16 %v1770_v16  ;;  %v1771_v20 = vunpack.i.l.bf16 %v1770_v16 }
0x169b   :  { %v923_v24 = vsel %vm35_vm2, %v915_v4, %v1772_v18  ;;  %v922_v3 = vsel %vm35_vm2, %v914_v22, %v1771_v20  ;;  %v1078_v18 = vld [vmem:[#allocation4] sm:$0xff] }
0x169c   :  { %v927_v28 = vpack.c.bf16 %v923_v24, %v922_v3 }
0x169e   :  { %1723 = vmatmul.mubr.msk.bf16.gmra.mrb[32].mxu0 %vm983_vm3, %v927_v28 }
0x1704   :  { %v1720_v43 = vpop.f32.mrb[28].mxu0 }
0x1705   :  { %v1039_v45 = vadd.f32 %v1720_v43, %v1562_v41  ;;  %v1030_v46 = vpop.f32.mrb[29].mxu0 }
0x1706   :  { %v1031_v15 = vadd.f32 %v1562_v41, %v1030_v46  ;;  %v1721_v47 = vpop.f32.mrb[30].mxu0  ;;  %v1102_v46 = vld [vmem:[#allocation4 + $0x48] sm:$0xff] }
0x1707   :  { %v1063_v48 = vmax.f32 %v1039_v45, 0.0  ;;  %v1042_v19 = vadd.f32 %v1721_v47, %v1562_v41  ;;  %v1033_v50 = vpop.f32.mrb[31].mxu0 }
0x1708   :  { %v1061_v51 = vmax.f32 %v1031_v15, 0.0  ;;  %v1034_v52 = vadd.f32 %v1562_v41, %v1033_v50 }
0x1709   :  { %1072 = vst.msk [vmem:[#allocation4 + $0x18] sm:$0xff] %vm35_vm2, %v1063_v48  ;;  %v1064_v53 = vmax.f32 %v1042_v19, 0.0 }
0x170a   :  { %1070 = vst.msk [vmem:[#allocation4 + $0x8] sm:$0xff] %vm35_vm2, %v1061_v51  ;;  %v1062_v55 = vmax.f32 %v1034_v52, 0.0 }
0x170b   :  { %1073 = vst.msk [vmem:[#allocation4 + $0x20] sm:$0xff] %vm35_vm2, %v1064_v53 }
0x170c   :  { %1071 = vst.msk [vmem:[#allocation4 + $0x10] sm:$0xff] %vm35_vm2, %v1062_v55 }
0x1710   :  { %v1088_v56 = vld [vmem:[#allocation4 + $0x18] sm:$0xff] }
0x1711   :  { %v1086_v60 = vld [vmem:[#allocation4 + $0x8] sm:$0xff] }
0x1712   :  { %v1089_v57 = vld [vmem:[#allocation4 + $0x20] sm:$0xff] }
0x1713   :  { %v1778_v58 = vpack.i.bf16 %v1089_v57, %v1088_v56  ;;  %v1095_v59 = vld [vmem:[#allocation4 + $0x10] sm:$0xff] }
0x1714   :  { %v1144_v61 = vpack.c.bf16 %v1088_v56, %v1095_v59  ;;  %v1773_v62 = vpack.i.bf16 %v1095_v59, %v1086_v60 }
0x1715   :  { %1779 = vrot.lane.b32.xlu0 %v1778_v58, %s1934_s20 }
0x1716   :  { %1586 = vmatprep.mubr.msk.bf16.mxu1 %vm35_vm2, %v1144_v61  ;;  %1774 = vrot.lane.b32.xlu1 %v1773_v62, %s1934_s20 }
0x1771   :  { %v1724_v63 = vpop.f32.mrb[32].mxu0 }
0x1772   :  { %v1055_v1 = vadd.f32 %v1724_v63, %v1562_v41  ;;  %v1046_v2 = vpop.f32.mrb[33].mxu0  ;;  %v1935_v63 = vmov 1  }
0x1773   :  { %v1047_v21 = vadd.f32 %v1562_v41, %v1046_v2  ;;  %v1725_v23 = vpop.f32.mrb[34].mxu0  ;;  %1794 = vset.pattern.permute.xlu0 %v1935_v63  ;;  %1793 = vset.pattern.permute.xlu1 %v1935_v63 }
0x1774   :  { %v1067_v5 = vmax.f32 %v1055_v1, 0.0  ;;  %v1058_v6 = vadd.f32 %v1725_v23, %v1562_v41  ;;  %v1049_v10 = vpop.f32.mrb[35].mxu0  ;;  %v1573_v1 = vld [vmem:[%s2413_s7] ss:$0 sm:$0xff]  ;;  %s1936_s7 = smov [#allocation5]  }
0x1775   :  { %v1065_v11 = vmax.f32 %v1047_v21, 0.0  ;;  %v1050_v13 = vadd.f32 %v1562_v41, %v1049_v10 }
0x1776   :  { %1076 = vst.msk [vmem:[#allocation4 + $0x38] sm:$0xff] %vm35_vm2, %v1067_v5  ;;  %v1068_v44 = vmax.f32 %v1058_v6, 0.0 }
0x1777   :  { %1074 = vst.msk [vmem:[#allocation4 + $0x28] sm:$0xff] %vm35_vm2, %v1065_v11  ;;  %v1066_v29 = vmax.f32 %v1050_v13, 0.0 }
0x1778   :  { %1077 = vst.msk [vmem:[#allocation4 + $0x40] sm:$0xff] %vm35_vm2, %v1068_v44 }
0x1779   :  { %1075 = vst.msk [vmem:[#allocation4 + $0x30] sm:$0xff] %vm35_vm2, %v1066_v29 }
0x177d   :  { %v1092_v8 = vld [vmem:[#allocation4 + $0x38] sm:$0xff] }
0x177e   :  { %v1090_v49 = vld [vmem:[#allocation4 + $0x28] sm:$0xff] }
0x177f   :  { %v1093_v14 = vld [vmem:[#allocation4 + $0x40] sm:$0xff]  ;;  %v1146_v35 = vpack.c.bf16 %v1090_v49, %v1089_v57 }
0x1780   :  { %v1788_v0 = vpack.i.bf16 %v1093_v14, %v1092_v8  ;;  %v1091_v16 = vld [vmem:[#allocation4 + $0x30] sm:$0xff]  ;;  %v1150_v51 = vpack.c.bf16 %v1102_v46, %v1093_v14 }
0x1781   :  { %v1783_v17 = vpack.i.bf16 %v1091_v16, %v1090_v49  ;;  %v1148_v40 = vpack.c.bf16 %v1092_v8, %v1091_v16 }
0x1782   :  { %1789 = vrot.lane.b32.xlu0 %v1788_v0, %s1934_s20 }
0x1783   :  { %1784 = vrot.lane.b32.xlu1 %v1783_v17, %s1934_s20 }
0x1787   :  { %v1780_v24 = vpop.permute.xlu0 %1779 }
0x1788   :  { %v1775_v20 = vpop.permute.xlu1 %1774  ;;  %v1782_v32 = vunpack.i.h.bf16 %v1780_v24  ;;  %v1781_v33 = vunpack.i.l.bf16 %v1780_v24 }
0x1789   :  { %v1777_v4 = vunpack.i.h.bf16 %v1775_v20  ;;  %v1776_v22 = vunpack.i.l.bf16 %v1775_v20 }
0x178a   :  { %v1137_v36 = vsel %vm35_vm2, %v1095_v59, %v1781_v33  ;;  %v1138_v38 = vsel %vm35_vm2, %v1088_v56, %v1782_v32 }
0x178b   :  { %v1135_v3 = vsel %vm35_vm2, %v1078_v18, %v1776_v22  ;;  %v1136_v28 = vsel %vm35_vm2, %v1086_v60, %v1777_v4  ;;  %v1145_v39 = vpack.c.bf16 %v1138_v38, %v1137_v36 }
0x178c   :  { %v1143_v25 = vpack.c.bf16 %v1136_v28, %v1135_v3 }
0x178e   :  { %1299 = vmatmul.mubr.bf16.vlgmr.msra.gmra.mrb[12].mxu1 %v1143_v25 }
0x178f   :  { %1587 = vmatprep.mubr.msk.bf16.mxu1 %vm35_vm2, %v1146_v35 }
0x1796   :  { %1307 = vmatmul.mubr.bf16.gmra.mrb[16].mxu1 %v1145_v39 }
0x1797   :  { %1588 = vmatprep.mubr.msk.bf16.mxu1 %vm35_vm2, %v1148_v40 }
0x17f4   :  { %v1790_v45 = vpop.permute.xlu0 %1789 }
0x17f5   :  { %v1785_v41 = vpop.permute.xlu1 %1784  ;;  %v1792_v19 = vunpack.i.h.bf16 %v1790_v45  ;;  %v1791_v50 = vunpack.i.l.bf16 %v1790_v45 }
0x17f6   :  { %v1787_v42 = vunpack.i.h.bf16 %v1785_v41  ;;  %v1786_v43 = vunpack.i.l.bf16 %v1785_v41 }
0x17f7   :  { %v1141_v52 = vsel %vm35_vm2, %v1091_v16, %v1791_v50  ;;  %v1142_v53 = vsel %vm35_vm2, %v1092_v8, %v1792_v19 }
0x17f8   :  { %v1139_v15 = vsel %vm35_vm2, %v1089_v57, %v1786_v43  ;;  %v1140_v47 = vsel %vm35_vm2, %v1090_v49, %v1787_v42  ;;  %v1149_v54 = vpack.c.bf16 %v1142_v53, %v1141_v52 }
0x17f9   :  { %v1147_v48 = vpack.c.bf16 %v1140_v47, %v1139_v15 }
0x17fb   :  { %1315 = vmatmul.mubr.bf16.gmra.mrb[20].mxu1 %v1147_v48 }
0x17fc   :  { %1589 = vmatprep.mubr.msk.bf16.mxu1 %vm35_vm2, %v1150_v51 }
0x1803   :  { %1323 = vmatmul.mubr.bf16.gmra.mrb[24].mxu1 %v1149_v54 }
0x1861   :  { %v1300_v55 = vpop.f32.mrb[12].mxu1 }
0x1862   :  { %v1302_v56 = vpop.f32.mrb[13].mxu1  ;;  %v1301_v2 = vadd.f32 %v1573_v1, %v1300_v55 }
0x1863   :  { %v1303_v58 = vpop.f32.mrb[14].mxu1 }
0x1864   :  { %v1305_v59 = vpop.f32.mrb[15].mxu1  ;;  %v1304_v23 = vadd.f32 %v1573_v1, %v1303_v58  ;;  %v1332_v11 = vsel %vm1331_vm4, %v1301_v2, -inf }
0x1866   :  { %v1333_v14 = vsel %vm1331_vm4, %v1304_v23, -inf }
0x1869   :  { %v1308_v57 = vpop.f32.mrb[16].mxu1 }
0x186a   :  { %v1310_v60 = vpop.f32.mrb[17].mxu1  ;;  %v1309_v16 = vadd.f32 %v1573_v1, %v1308_v57 }
0x186b   :  { %v1311_v61 = vpop.f32.mrb[18].mxu1 }
0x186c   :  { %v1313_v62 = vpop.f32.mrb[19].mxu1  ;;  %v1312_v20 = vadd.f32 %v1573_v1, %v1311_v61  ;;  %v1334_v3 = vsel %vm1331_vm4, %v1309_v16, -inf }
0x186e   :  { %v1335_v35 = vsel %vm1331_vm4, %v1312_v20, -inf }
0x18ce   :  { %v1316_v21 = vpop.f32.mrb[20].mxu1 }
0x18cf   :  { %v1317_v5 = vadd.f32 %v1573_v1, %v1316_v21  ;;  %v1318_v6 = vpop.f32.mrb[21].mxu1 }
0x18d0   :  { %v1319_v10 = vpop.f32.mrb[22].mxu1 }
0x18d1   :  { %v1336_v13 = vsel %vm1331_vm4, %v1317_v5, -inf  ;;  %v1320_v44 = vadd.f32 %v1573_v1, %v1319_v10  ;;  %v1321_v29 = vpop.f32.mrb[23].mxu1 }
0x18d2   :  { %v1337_v8 = vmax.f32 %v1332_v11, %v1336_v13 }
0x18d3   :  { %v1338_v0 = vsel %vm1331_vm4, %v1320_v44, -inf }
0x18d4   :  { %v1339_v49 = vmax.f32 %v1333_v14, %v1338_v0 }
0x18d6   :  { %v1344_v17 = vmax.f32 %v1337_v8, %v1339_v49  ;;  %v1324_v18 = vpop.f32.mrb[24].mxu1 }
0x18d7   :  { %v1325_v4 = vadd.f32 %v1573_v1, %v1324_v18  ;;  %v1326_v22 = vpop.f32.mrb[25].mxu1 }
0x18d8   :  { %v1327_v24 = vpop.f32.mrb[26].mxu1 }
0x18d9   :  { %v1340_v28 = vsel %vm1331_vm4, %v1325_v4, -inf  ;;  %v1328_v25 = vadd.f32 %v1573_v1, %v1327_v24  ;;  %v1329_v32 = vpop.f32.mrb[27].mxu1 }
0x18da   :  { %v1341_v33 = vmax.f32 %v1334_v3, %v1340_v28 }
0x18db   :  { %v1342_v36 = vsel %vm1331_vm4, %v1328_v25, -inf }
0x18dc   :  { %v1343_v38 = vmax.f32 %v1335_v35, %v1342_v36 }
0x18de   :  { %v1345_v39 = vmax.f32 %v1341_v33, %v1343_v38 }
0x18e0   :  { %v1346_v40 = vmax.f32 %v1344_v17, %v1345_v39 }
0x18e2   :  { %v1347_v41 = vsub.f32 %v1301_v2, %v1346_v40  ;;  %v1349_v42 = vsub.f32 %v1309_v16, %v1346_v40  ;;  %v1350_v43 = vsub.f32 %v1312_v20, %v1346_v40  ;;  %v1351_v45 = vsub.f32 %v1317_v5, %v1346_v40 }
0x18e3   :  { %v1352_v46 = vsub.f32 %v1320_v44, %v1346_v40  ;;  %v1353_v15 = vsub.f32 %v1325_v4, %v1346_v40  ;;  %v1354_v47 = vsub.f32 %v1328_v25, %v1346_v40  ;;  %v1348_v48 = vsub.f32 %v1304_v23, %v1346_v40 }
0x18e4   :  { %v1359_v19 = vmul.f32 1.442695, %v1349_v42  ;;  %v1355_v50 = vmul.f32 1.442695, %v1347_v41  ;;  %v1361_v52 = vmul.f32 1.442695, %v1350_v43 }
0x18e5   :  { %v1357_v51 = vmul.f32 1.442695, %v1348_v48  ;;  %v1363_v53 = vmul.f32 1.442695, %v1351_v45  ;;  %v1365_v54 = vmul.f32 1.442695, %v1352_v46 }
0x18e6   :  { %1888 = vpow2.f32 %v1359_v19  ;;  %v1367_v55 = vmul.f32 1.442695, %v1353_v15  ;;  %v1369_v56 = vmul.f32 1.442695, %v1354_v47 }
0x18e7   :  { %1890 = vpow2.f32 %v1355_v50 }
0x18e8   :  { %1892 = vpow2.f32 %v1357_v51 }
0x18e9   :  { %1894 = vpow2.f32 %v1361_v52 }
0x18ea   :  { %1896 = vpow2.f32 %v1363_v53 }
0x18eb   :  { %1898 = vpow2.f32 %v1365_v54 }
0x18ec   :  { %1900 = vpow2.f32 %v1367_v55 }
0x18ed   :  { %1902 = vpow2.f32 %v1369_v56 }
0x18f0   :  { %v1889_v58 = vpop.eup %1888 }
0x18f1   :  { %v1891_v59 = vpop.eup %1890  ;;  %v1374_v2 = vsel %vm1331_vm4, %v1889_v58, 0.0 }
0x18f2   :  { %v1893_v57 = vpop.eup %1892  ;;  %v1371_v60 = vsel %vm1331_vm4, %v1891_v59, 0.0 }
0x18f3   :  { %v1372_v61 = vsel %vm1331_vm4, %v1893_v57, 0.0  ;;  %v1895_v62 = vpop.eup %1894 }
0x18f4   :  { %v1373_v1 = vadd.f32 %v1372_v61, %v1371_v60  ;;  %v1897_v21 = vpop.eup %1896  ;;  %v1376_v5 = vsel %vm1331_vm4, %v1895_v62, 0.0 }
0x18f5   :  { %v1899_v6 = vpop.eup %1898  ;;  %v1378_v11 = vsel %vm1331_vm4, %v1897_v21, 0.0 }
0x18f6   :  { %v1375_v23 = vadd.f32 %v1374_v2, %v1373_v1  ;;  %v1901_v13 = vpop.eup %1900  ;;  %v1380_v29 = vsel %vm1331_vm4, %v1899_v6, 0.0 }
0x18f7   :  { %v1903_v8 = vpop.eup %1902  ;;  %v1382_v0 = vsel %vm1331_vm4, %v1901_v13, 0.0 }
0x18f8   :  { %v1377_v10 = vadd.f32 %v1376_v5, %v1375_v23  ;;  %v1384_v16 = vsel %vm1331_vm4, %v1903_v8, 0.0 }
0x18fa   :  { %v1379_v44 = vadd.f32 %v1378_v11, %v1377_v10 }
0x18fc   :  { %v1381_v14 = vadd.f32 %v1380_v29, %v1379_v44 }
0x18fe   :  { %v1383_v49 = vadd.f32 %v1382_v0, %v1381_v14 }
0x1900   :  { %v1385_v17 = vadd.f32 %v1384_v16, %v1383_v49 }
0x1902   :  { %1904 = vrcp.f32 %v1385_v17 }
0x190c   :  { %v1905_v18 = vpop.eup %1904 }
0x190d   :  { %v1388_v20 = vmul.f32 %v1905_v18, %v1893_v57  ;;  %v1387_v4 = vmul.f32 %v1905_v18, %v1891_v59  ;;  %v1391_v22 = vmul.f32 %v1905_v18, %v1897_v21  ;;  %v1389_v24 = vmul.f32 %v1905_v18, %v1889_v58 }
0x190e   :  { %v1393_v3 = vmul.f32 %v1905_v18, %v1901_v13  ;;  %v1390_v28 = vmul.f32 %v1905_v18, %v1895_v62  ;;  %v1392_v25 = vmul.f32 %v1905_v18, %v1899_v6  ;;  %v1394_v32 = vmul.f32 %v1905_v18, %v1903_v8 }
0x190f   :  { %1463 = vperm.xlu0 %1794, %v1388_v20   ;;  %1459 = vperm.xlu1 %1793, %v1387_v4  }
0x1913   :  { %1475 = vperm.xlu0 %1794, %v1391_v22   ;;  %1467 = vperm.xlu1 %1793, %v1389_v24  }
0x1917   :  { %1483 = vperm.xlu0 %1794, %v1393_v3   ;;  %1471 = vperm.xlu1 %1793, %v1390_v28  }
0x191b   :  { %1795 = vset.pattern.permute.xlu0 %v1932_v9  ;;  %1479 = vperm.xlu1 %1793, %v1392_v25  }
0x191c   :  { %1397 = vperm.xlu0 %1795, %v1387_v4  }
0x191f   :  { %1487 = vperm.xlu1 %1793, %v1394_v32  }
0x1920   :  { %1412 = vperm.xlu0 %1795, %v1390_v28  }
0x1923   :  { %1796 = vset.pattern.permute.xlu1 %v1932_v9 }
0x1924   :  { %1422 = vperm.xlu0 %1795, %v1392_v25   ;;  %1402 = vperm.xlu1 %1796, %v1388_v20  }
0x1928   :  { %1432 = vperm.xlu0 %1795, %v1394_v32   ;;  %1407 = vperm.xlu1 %1796, %v1389_v24  }
0x192c   :  { %1417 = vperm.xlu1 %1796, %v1391_v22   ;;  %1797 = vset.pattern.permute.xlu0 %v1935_v63 }
0x1930   :  { %1427 = vperm.xlu1 %1796, %v1393_v3  }
0x198e   :  { %v1464_v33 = vpop.permute.xlu0 %1463  ;;  %v1460_v35 = vpop.permute.xlu1 %1459 }
0x198f   :  { %v1491_v36 = vmul.f32 %v1464_v33, %v2195_v12  ;;  %v1490_v38 = vmul.f32 %v1460_v35, %v2193_v26 }
0x1991   :  { %v1499_v41 = vsel %vm31_vm0, %v1491_v36, 0.0  ;;  %v1498_v9 = vsel %vm31_vm0, %v1490_v38, 0.0 }
0x1992   :  { %v1476_v39 = vpop.permute.xlu0 %1475  ;;  %v1468_v40 = vpop.permute.xlu1 %1467  ;;  %v1500_v45 = vadd.f32 %v1499_v41, %v1498_v9 }
0x1993   :  { %v1492_v42 = vmul.f32 %v1468_v40, %v2201_v7  ;;  %v1494_v63 = vmul.f32 %v1476_v39, %v2211_v30 }
0x1995   :  { %v1501_v43 = vsel %vm31_vm0, %v1492_v42, 0.0  ;;  %v1505_v52 = vsel %vm31_vm0, %v1494_v63, 0.0 }
0x1996   :  { %v1472_v46 = vpop.permute.xlu1 %1471  ;;  %v1502_v47 = vadd.f32 %v1501_v43, %v1500_v45  ;;  %v1484_v48 = vpop.permute.xlu0 %1483 }
0x1997   :  { %v1493_v15 = vmul.f32 %v1472_v46, %v2203_v27  ;;  %v1496_v53 = vmul.f32 %v1484_v48, %v2221_v34 }
0x1999   :  { %v1503_v19 = vsel %vm31_vm0, %v1493_v15, 0.0  ;;  %v1509_v57 = vsel %vm31_vm0, %v1496_v53, 0.0 }
0x199a   :  { %v1504_v50 = vadd.f32 %v1503_v19, %v1502_v47  ;;  %v1480_v51 = vpop.permute.xlu1 %1479 }
0x199b   :  { %v1495_v54 = vmul.f32 %v1480_v51, %v2213_v31  ;;  %v1398_v21 = vpop.permute.xlu0 %1397 }
0x199c   :  { %v1506_v55 = vadd.f32 %v1505_v52, %v1504_v50  ;;  %v1435_v6 = vmul.f32 %v1398_v21, %v2193_v26 }
0x199d   :  { %v1507_v56 = vsel %vm31_vm0, %v1495_v54, 0.0 }
0x199e   :  { %v1508_v58 = vadd.f32 %v1507_v56, %v1506_v55  ;;  %v1488_v59 = vpop.permute.xlu1 %1487  ;;  %v1443_v44 = vsel %vm31_vm0, %v1435_v6, 0.0 }
0x199f   :  { %v1497_v60 = vmul.f32 %v1488_v59, %v2227_v37  ;;  %v1413_v13 = vpop.permute.xlu0 %1412 }
0x19a0   :  { %v1510_v61 = vadd.f32 %v1509_v57, %v1508_v58  ;;  %v1438_v0 = vmul.f32 %v1413_v13, %v2203_v27 }
0x19a1   :  { %v1511_v62 = vsel %vm31_vm0, %v1497_v60, 0.0 }
0x19a2   :  { %v1512_v1 = vadd.f32 %v1511_v62, %v1510_v61 }
0x19a3   :  { %v1403_v2 = vpop.permute.xlu1 %1402  ;;  %v1423_v17 = vpop.permute.xlu0 %1422 }
0x19a4   :  { %1514 = vrot.lane.b32.xlu1 %v1512_v1, %s1933_s3  ;;  %v1436_v5 = vmul.f32 %v1403_v2, %v2195_v12  ;;  %v1448_v12 = vsel %vm31_vm0, %v1438_v0, 0.0  ;;  %v1440_v20 = vmul.f32 %v1423_v17, %v2213_v31  ;;  %s1526_s3 = sshll.u32 %s1936_s7, 4  ;;  %s1527_s3 = int_to_ptr.vmem [resolvable:$true] %s1526_s3 }
0x19a5   :  { %s1906_s4 = scalar_lea.vmem %s1527_s3, 128  ;;  %p1911_p1 = scmp.lt.s32.totalorder %s1527_s3, %s1527_s3 }
0x19a6   :  { %v1444_v11 = vsel %vm31_vm0, %v1436_v5, 0.0  ;;  %v1452_v24 = vsel %vm31_vm0, %v1440_v20, 0.0  ;;  %p1907_p0 = scmp.ne.s32.totalorder %s1527_s3, %s1906_s4  ;;  %p1912_p2 = scmp.lt.s32.totalorder %s1906_s4, %s1906_s4 }
0x19a7   :  { %v1408_v23 = vpop.permute.xlu1 %1407  ;;  %v1445_v8 = vadd.f32 %v1444_v11, %v1443_v44  ;;  %v1433_v3 = vpop.permute.xlu0 %1432 }
0x19a8   :  { %v1437_v10 = vmul.f32 %v1408_v23, %v2201_v7  ;;  %p1913_p3 = por %p1912_p2, %p1911_p1 }
0x19aa   :  { %v1446_v29 = vsel %vm31_vm0, %v1437_v10, 0.0  ;;  %p1914_p4 = pnand %p1913_p3, %p1907_p0 }
0x19ab   :  { %v1418_v14 = vpop.permute.xlu1 %1417  ;;  %v1447_v49 = vadd.f32 %v1446_v29, %v1445_v8 }
0x19ac   :  { %v1439_v16 = vmul.f32 %v1418_v14, %v2211_v30  ;;  %v1442_v30 = vmul.f32 %v1433_v3, %v2227_v37 }
0x19ad   :  { %v1449_v26 = vadd.f32 %v1448_v12, %v1447_v49 }
0x19ae   :  { %v1450_v7 = vsel %vm31_vm0, %v1439_v16, 0.0  ;;  %v1456_v32 = vsel %vm31_vm0, %v1442_v30, 0.0 }
0x19af   :  { %v1428_v18 = vpop.permute.xlu1 %1427  ;;  %v1451_v4 = vadd.f32 %v1450_v7, %v1449_v26 }
0x19b0   :  { %v1441_v22 = vmul.f32 %v1428_v18, %v2221_v34 }
0x19b1   :  { %v1453_v28 = vadd.f32 %v1452_v24, %v1451_v4 }
0x19b2   :  { %v1454_v27 = vsel %vm31_vm0, %v1441_v22, 0.0 }
0x19b3   :  { %v1455_v25 = vadd.f32 %v1454_v27, %v1453_v28 }
0x19b5   :  { %v1457_v33 = vadd.f32 %v1456_v32, %v1455_v25 }
0x1a16   :  { %v1515_v35 = vpop.permute.xlu1 %1514 }
0x1a17   :  { %v1517_v31 = vsel %vm31_vm0, %v1457_v33, %v1515_v35 }
0x1a18   :  { %v1518_v34 = vsel %vm35_vm2, %v1517_v31, 0.0 }
0x1a19   :  { %1519 = vst [vmem:[#allocation5] sm:$0xff] %v1518_v34 }
0x1a1a   :  { %1917 = shalt.err (!%p1914_p4)
}
0x1a1b   :  { %s1918_s12 = scalar_lea.hbm %s2414_s8, 128 }
0x1a1c   :  { %p1919_p5 = scmp.ne.s32.totalorder %s2414_s8, %s1918_s12  ;;  %p1922_p6 = scmp.lt.u32.totalorder %s1918_s12, %s2414_s8 }
0x1a1e   :  { %p1924_p7 = pnand %p1922_p6, %p1919_p5 }
0x1a20   :  { %1927 = shalt.err (!%p1924_p7)
}
0x1a21   :  { %1529 = dma.vmem_to_hbm [thread:$0]  %s1527_s3, 128, %s2414_s8, [#allocation6]  }
0x1a22   :  { %1928 = dma.done.wait [#allocation6], 128  }
0x1a23   :  { %1929 = vsyncadd [#allocation6], 4294967168 }
0x1a24   :  { %1533 = vsyncpa [#allocation6], 1 }

</bundles_post_ra>
